<compile_context>
chip_gen: v6e
topology: v6e:2x2x1
jax: 0.10.0
libtpu: 0.0.40
codegen_flags: <defaults>
</compile_context>

<pallas_src>
import jax
import jax.numpy as jnp
from jax.experimental import pallas as pl
from jax.experimental.pallas import tpu as pltpu

VMEM = pl.BlockSpec(memory_space=pltpu.MemorySpace.VMEM)
LANES = 128


# ---------------------------------------------------------------------------
# Fused forward kernel (entire network in one pallas_call)
# ---------------------------------------------------------------------------
def _make_forward_kernel(cfg, n_nodes):
    heads = cfg["heads"]
    gat_layers = cfg["gat"]
    fcm_layers = cfg["fcm"]
    fc_layers = cfg["fc"]
    n_fc = len(fc_layers)
    N = n_nodes

    def silu(v):
        return v * jax.nn.sigmoid(v)

    def kernel(x_ref, adj_ref, pool_ref, mol_ref, slab_ref, o_ref):
        def read(spec):                      # static, tile-aligned slab view
            off, r, c = spec
            return slab_ref[off:off + r, :c]

        adj3 = adj_ref[...]                                   # [N, N, 1] in {0,1}
        neg_bias = (1.0 - adj3) * jnp.float32(-1e30)          # hoisted, reused

        # ----- graph branch: GATv2 layers (lin_l|lin_r merged, BN folded) -----
        h = x_ref[...]                                        # [N, F_in]
        for L in gat_layers:
            C, HC = L["C"], L["HC"]
            w_lr = read(L["w_lr"])                            # [F, 2*H*C]
            b_lr = read(L["b_lr"])                            # [1, 2*H*C]
            a_blk = read(L["a_blk"])                          # [H*C, H] block-diag att
            a_exp = read(L["a_exp"])                          # [H, H*C] head->lane 0/1
            bias = read(L["bias"])                            # [1, H*C]

            z = jnp.dot(h, w_lr, preferred_element_type=jnp.float32) + b_lr
            xl = z[:, :HC]                                    # source-side [N, H*C]
            xr = z[:, HC:]                                    # target-side [N, H*C]

            # LeakyReLU(x_l[src] + x_r[dst]) for all heads, lane-dense on H*C.
            s3 = xl[None, :, :] + xr[:, None, :]              # [N_dst, N_src, H*C]
            s3 = jnp.where(s3 > 0, s3, jnp.float32(0.2) * s3)

            # attention logits for all heads with ONE MXU matmul
            e3 = jnp.dot(s3.reshape(N * N, HC), a_blk,
                         preferred_element_type=jnp.float32).reshape(N, N, heads)

            # masked softmax over sources, batched over (dst, head)
            e3 = e3 * adj3 + neg_bias
            m = jnp.max(e3, axis=1, keepdims=True)            # [N, 1, H]
            p = jnp.exp(e3 - m) * adj3                        # [N, N, H]
            denom = jnp.maximum(jnp.sum(p, axis=1), jnp.float32(1e-20))   # [N, H]

            # aggregation for all heads at once: lane-expand alpha on the MXU,
            # weight x_l, reduce over sources -> lane-dense [N, H*C] directly
            t3 = jnp.dot(p.reshape(N * N, heads), a_exp,
                         preferred_element_type=jnp.float32).reshape(N, N, HC)
            h_un = jnp.sum(t3 * xl[None, :, :], axis=1)       # [N, H*C]
            d_exp = jnp.dot(denom, a_exp, preferred_element_type=jnp.float32)
            h = h_un / d_exp                                  # softmax normalization

            if L["scale"] is not None:                        # folded BN (layer 0 only)
                h = h * read(L["scale"])
            h = silu(h + bias)

        # ----- global_add_pool as a matmul with the [G, N] membership matrix -----
        hg = jnp.dot(pool_ref[...], h, preferred_element_type=jnp.float32)   # [G, H*C]

        # ----- molecular branch (eval-mode BN folded into the first linear) -----
        hm = mol_ref[...]
        for Lm in fcm_layers:
            hm = silu(jnp.dot(hm, read(Lm["w"]),
                              preferred_element_type=jnp.float32) + read(Lm["b"]))

        # ----- fused fc head; the input concat is replaced by a split weight -----
        for i, Lf in enumerate(fc_layers):
            if Lf["split"]:
                hg = (jnp.dot(hg, read(Lf["w_g"]), preferred_element_type=jnp.float32)
                      + jnp.dot(hm, read(Lf["w_m"]), preferred_element_type=jnp.float32)
                      + read(Lf["b"]))
            else:
                hg = jnp.dot(hg, read(Lf["w"]),
                             preferred_element_type=jnp.float32) + read(Lf["b"])
            if i < n_fc - 1:
                hg = silu(hg)

        o_ref[...] = hg.astype(o_ref.dtype)

    return kernel


def gatv2_forward(packed, x, adj3, pool_mat, mol_feats):
    G = pool_mat.shape[0]
    N = x.shape[0]
    kern = _make_forward_kernel(packed["cfg"], N)
    return pl.pallas_call(
        kern,
        out_shape=jax.ShapeDtypeStruct((G, packed["out_dim"]), jnp.float32),
        in_specs=[VMEM] * 5,
        out_specs=VMEM,
    )(x, adj3, pool_mat, mol_feats, packed["slab"])


# ---------------------------------------------------------------------------
# Parameter construction (deterministic) — mirrors GATv2.__init__
# ---------------------------------------------------------------------------
def build_params(key, num_node_feats, num_edge_feats, n_mol_feats,
                 multi_head, dims, n_layers):
    keys = iter(jax.random.split(key, 64))

    def lin(fan_in, fan_out):
        kw, kb = jax.random.split(next(keys))
        w = jax.random.normal(kw, (fan_in, fan_out), jnp.float32) * 0.1
        b = jax.random.normal(kb, (fan_out,), jnp.float32) * 0.1
        return (w, b)

    def gat(in_ch, out_ch, heads):
        w_l, b_l = lin(in_ch, heads * out_ch)
        w_r, b_r = lin(in_ch, heads * out_ch)
        att = jax.random.normal(next(keys), (heads * out_ch,), jnp.float32) * 0.1
        bias = jnp.zeros((heads * out_ch,), jnp.float32)
        return dict(w_l=w_l, b_l=b_l, w_r=w_r, b_r=b_r, att=att, bias=bias,
                    heads=heads, out=out_ch)

    def bn(feat):  # (gamma, beta, running_mean, running_var) — eval mode
        return (jnp.ones((feat,), jnp.float32), jnp.zeros((feat,), jnp.float32),
                jnp.zeros((feat,), jnp.float32), jnp.ones((feat,), jnp.float32))

    gc = [gat(num_node_feats, dims[0], multi_head)]
    if n_layers[0] > 2:
        for _ in range(n_layers[0] - 2):
            gc.append(gat(dims[0] * multi_head, dims[0], multi_head))
    gc.append(gat(dims[0] * multi_head, dims[1], multi_head))
    bn_gc = bn(dims[0] * multi_head)

    fc_m = [lin(n_mol_feats, dims[0])]
    bn_m = bn(dims[0])
    if n_layers[1] > 2:
        for _ in range(n_layers[1] - 2):
            fc_m.append(lin(dims[0], dims[0]))
    fc_m.append(lin(dims[0], dims[1]))

    fc = [lin(dims[1] * multi_head + dims[1], dims[2])]
    for _ in range(n_layers[2] - 3):
        fc.append(lin(dims[2], dims[2]))
    fc.append(lin(dims[2], dims[3]))
    fc.append(lin(dims[3], dims[-1]))

    return dict(gc=gc, bn_gc=bn_gc, fc_m=fc_m, bn_m=bn_m, fc=fc)


class _SlabBuilder:
    """Packs parameter blocks into one lane-aligned [R, 128] f32 VMEM slab."""

    def __init__(self):
        self._blocks = []
        self._row = 0

    def add(self, arr):
        arr = jnp.asarray(arr, jnp.float32)
        if arr.ndim == 1:
            arr = arr.reshape(1, -1)
        r, c = arr.shape
        assert c <= LANES, f"block wider than {LANES} lanes: {arr.shape}"
        rp = -(-r // 8) * 8                       # row-pad to a sublane multiple
        blk = jnp.zeros((rp, LANES), jnp.float32).at[:r, :c].set(arr)
        off = self._row
        self._blocks.append(blk)
        self._row += rp
        return (off, r, c)                        # static Python ints for the kernel

    def finish(self):
        return jnp.concatenate(self._blocks, axis=0)


def pack_params(raw, multi_head, dims):
    """Fuse lin_l|lin_r, fold eval-mode BN, build att matrices, pack one slab."""
    eps = jnp.float32(1e-5)
    H = multi_head

    def bn_fold(bnp):
        gamma, beta, mean, var = bnp
        scale = gamma / jnp.sqrt(var + eps)
        shift = beta - mean * scale
        return scale, shift

    sb = _SlabBuilder()

    gat_cfg = []
    gc_scale, gc_shift = bn_fold(raw["bn_gc"])
    for li, p in enumerate(raw["gc"]):
        C = p["out"]
        HC = H * C
        w_lr = jnp.concatenate([p["w_l"], p["w_r"]], axis=1)            # [F, 2HC]
        b_lr = jnp.concatenate([p["b_l"], p["b_r"]]).reshape(1, 2 * HC)
        # block-diagonal attention matrix [HC, H]: head h's att in rows h*C:(h+1)*C
        a_blk = jnp.zeros((HC, H), jnp.float32)
        for hh in range(H):
            a_blk = a_blk.at[hh * C:(hh + 1) * C, hh].set(p["att"][hh * C:(hh + 1) * C])
        # head -> lane expansion matrix [H, HC] (0/1)
        a_exp = (jnp.arange(HC)[None, :] // C ==
                 jnp.arange(H)[:, None]).astype(jnp.float32)
        if li == 0:   # silu(bn_gc(conv0(x))) -> fold BN into per-lane scale/bias
            scale_spec = sb.add(gc_scale.reshape(1, HC))
            bias = (p["bias"] * gc_scale + gc_shift).reshape(1, HC)
        else:
            scale_spec = None
            bias = p["bias"].reshape(1, HC)
        gat_cfg.append(dict(C=C, HC=HC,
                            w_lr=sb.add(w_lr), b_lr=sb.add(b_lr),
                            a_blk=sb.add(a_blk), a_exp=sb.add(a_exp),
                            bias=sb.add(bias), scale=scale_spec))

    m_scale, m_shift = bn_fold(raw["bn_m"])
    fcm_cfg = []
    for li, (w, b) in enumerate(raw["fc_m"]):
        if li == 0:   # fold bn_m into the first molecular linear
            w = w * m_scale[None, :]
            b = b * m_scale + m_shift
        fcm_cfg.append(dict(w=sb.add(w), b=sb.add(b.reshape(1, -1))))

    fc_cfg = []
    HC_last = gat_cfg[-1]["HC"]
    for li, (w, b) in enumerate(raw["fc"]):
        if li == 0:   # split first fc weight: torch.cat([hg, h_m]) order
            fc_cfg.append(dict(split=True,
                               w_g=sb.add(w[:HC_last, :]),
                               w_m=sb.add(w[HC_last:, :]),
                               b=sb.add(b.reshape(1, -1))))
        else:
            fc_cfg.append(dict(split=False, w=sb.add(w), b=sb.add(b.reshape(1, -1))))

    cfg = dict(heads=H, gat=gat_cfg, fcm=fcm_cfg, fc=fc_cfg)
    return dict(cfg=cfg, slab=sb.finish(), out_dim=dims[-1])


# ---------------------------------------------------------------------------
if __name__ == "__main__":
    # module hyper-parameters (small, consistent with the torch __init__)
    num_node_feats = 16
    num_edge_feats = 8      # unused by forward() (edge_attr never passed)
    n_mol_feats = 16
    multi_head = 2
    dims = [16, 16, 32, 16, 2]
    n_layers = [2, 2, 3]

    key = jax.random.PRNGKey(0)
    k_par, k_x, k_m = jax.random.split(key, 3)
    raw = build_params(k_par, num_node_feats, num_edge_feats, n_mol_feats,
                       multi_head, dims, n_layers)
    packed = pack_params(raw, multi_head, dims)

    # synthetic batched graph: 2 graphs x 4 nodes, bidirectional chains
    N, G = 8, 2
    x = jax.random.normal(k_x, (N, num_node_feats), jnp.float32)
    mol_feats = jax.random.normal(k_m, (G, n_mol_feats), jnp.float32)
    batch = jnp.array([0, 0, 0, 0, 1, 1, 1, 1], jnp.int32)
    edge_index = jnp.array(
        [[0, 1, 1, 2, 2, 3, 4, 5, 5, 6, 6, 7],    # source
         [1, 0, 2, 1, 3, 2, 5, 4, 6, 5, 7, 6]],   # target
        jnp.int32)

    # dense adjacency mask adj[dst, src] with self loops (add_self_loops=True),
    # passed to the kernel as [N, N, 1] so the head axis broadcasts on lanes.
    adj = jnp.zeros((N, N), jnp.float32)
    adj = adj.at[edge_index[1], edge_index[0]].set(1.0)
    adj = adj.at[jnp.arange(N), jnp.arange(N)].set(1.0)
    adj3 = adj[:, :, None]

    # one-hot graph membership for global_add_pool
    pool_mat = (batch[None, :] == jnp.arange(G)[:, None]).astype(jnp.float32)

    out = gatv2_forward(packed, x, adj3, pool_mat, mol_feats)
    jax.block_until_ready(out)
    assert out.shape == (G, dims[-1])
    print("KERNEL_OK")
</pallas_src>

<mosaic_0001>
module attributes {stable_mosaic.version = 11 : i64} {
  func.func @kernel(%arg0: memref<8x16xf32, #tpu.memory_space<vmem>>, %arg1: memref<8x8x1xf32, #tpu.memory_space<vmem>>, %arg2: memref<2x8xf32, #tpu.memory_space<vmem>>, %arg3: memref<2x16xf32, #tpu.memory_space<vmem>>, %arg4: memref<336x128xf32, #tpu.memory_space<vmem>>, %arg5: memref<2x2xf32, #tpu.memory_space<vmem>>) attributes {dimension_semantics = [], scalar_prefetch = 0 : i64, scratch_operands = 0 : i64, tpu.core_type = #tpu.core_type<tc>} {
    %c0 = arith.constant 0 : index
    %c0_0 = arith.constant 0 : index
    %c0_1 = arith.constant 0 : index
    %0 = vector.load %arg1[%c0, %c0_0, %c0_1] : memref<8x8x1xf32, #tpu.memory_space<vmem>>, vector<8x8x1xf32>
    %cst = arith.constant 1.000000e+00 : f32
    %1 = vector.broadcast %cst : f32 to vector<8x8x1xf32>
    %2 = arith.subf %1, %0 : vector<8x8x1xf32>
    %cst_2 = arith.constant -1.000000e+30 : f32
    %3 = vector.broadcast %cst_2 : f32 to vector<8x8x1xf32>
    %4 = arith.mulf %2, %3 : vector<8x8x1xf32>
    %c0_3 = arith.constant 0 : index
    %c0_4 = arith.constant 0 : index
    %5 = vector.load %arg0[%c0_3, %c0_4] : memref<8x16xf32, #tpu.memory_space<vmem>>, vector<8x16xf32>
    %c8 = arith.constant 8 : index
    %c0_5 = arith.constant 0 : index
    %6 = vector.load %arg4[%c8, %c0_5] : memref<336x128xf32, #tpu.memory_space<vmem>>, vector<16x64xf32>
    %c24 = arith.constant 24 : index
    %c0_6 = arith.constant 0 : index
    %7 = vector.load %arg4[%c24, %c0_6] : memref<336x128xf32, #tpu.memory_space<vmem>>, vector<1x64xf32>
    %c32 = arith.constant 32 : index
    %c0_7 = arith.constant 0 : index
    %8 = vector.load %arg4[%c32, %c0_7] : memref<336x128xf32, #tpu.memory_space<vmem>>, vector<32x2xf32>
    %c64 = arith.constant 64 : index
    %c0_8 = arith.constant 0 : index
    %9 = vector.load %arg4[%c64, %c0_8] : memref<336x128xf32, #tpu.memory_space<vmem>>, vector<2x32xf32>
    %c72 = arith.constant 72 : index
    %c0_9 = arith.constant 0 : index
    %10 = vector.load %arg4[%c72, %c0_9] : memref<336x128xf32, #tpu.memory_space<vmem>>, vector<1x32xf32>
    %cst_10 = arith.constant dense<0.000000e+00> : vector<8x64xf32>
    %11 = tpu.matmul %5, %6, %cst_10 {dimension_numbers = #tpu.dot_dimension_numbers<[1], [0], [0], [1], [0, 0, 1, 1], [], []>} : vector<8x16xf32>, vector<16x64xf32>, vector<8x64xf32> -> vector<8x64xf32>
    %12 = vector.broadcast %7 : vector<1x64xf32> to vector<8x64xf32>
    %13 = arith.addf %11, %12 : vector<8x64xf32>
    %14 = vector.extract_strided_slice %13 {offsets = [0, 0], sizes = [8, 32], strides = [1, 1]} : vector<8x64xf32> to vector<8x32xf32>
    %15 = vector.extract_strided_slice %13 {offsets = [0, 32], sizes = [8, 32], strides = [1, 1]} : vector<8x64xf32> to vector<8x32xf32>
    %16 = vector.shape_cast %14 : vector<8x32xf32> to vector<1x8x32xf32>
    %17 = vector.shape_cast %15 : vector<8x32xf32> to vector<8x1x32xf32>
    %18 = vector.broadcast %16 : vector<1x8x32xf32> to vector<8x8x32xf32>
    %19 = vector.broadcast %17 : vector<8x1x32xf32> to vector<8x8x32xf32>
    %20 = arith.addf %18, %19 : vector<8x8x32xf32>
    %cst_11 = arith.constant 0.000000e+00 : f32
    %21 = vector.broadcast %cst_11 : f32 to vector<8x8x32xf32>
    %22 = arith.cmpf ogt, %20, %21 : vector<8x8x32xf32>
    %cst_12 = arith.constant 2.000000e-01 : f32
    %23 = vector.broadcast %cst_12 : f32 to vector<8x8x32xf32>
    %24 = arith.mulf %23, %20 : vector<8x8x32xf32>
    %25 = arith.select %22, %20, %24 : vector<8x8x32xi1>, vector<8x8x32xf32>
    %26 = vector.shape_cast %25 : vector<8x8x32xf32> to vector<64x32xf32>
    %cst_13 = arith.constant dense<0.000000e+00> : vector<64x2xf32>
    %27 = tpu.matmul %26, %8, %cst_13 {dimension_numbers = #tpu.dot_dimension_numbers<[1], [0], [0], [1], [0, 0, 1, 1], [], []>} : vector<64x32xf32>, vector<32x2xf32>, vector<64x2xf32> -> vector<64x2xf32>
    %28 = vector.shape_cast %27 : vector<64x2xf32> to vector<8x8x2xf32>
    %29 = vector.broadcast %0 : vector<8x8x1xf32> to vector<8x8x2xf32>
    %30 = arith.mulf %28, %29 : vector<8x8x2xf32>
    %31 = vector.broadcast %4 : vector<8x8x1xf32> to vector<8x8x2xf32>
    %32 = arith.addf %30, %31 : vector<8x8x2xf32>
    %cst_14 = arith.constant dense<0xFF800000> : vector<8x2xf32>
    %33 = vector.multi_reduction <maximumf>, %32, %cst_14 [1] : vector<8x8x2xf32> to vector<8x2xf32>
    %34 = vector.shape_cast %33 : vector<8x2xf32> to vector<8x1x2xf32>
    %35 = vector.broadcast %34 : vector<8x1x2xf32> to vector<8x8x2xf32>
    %36 = arith.subf %32, %35 : vector<8x8x2xf32>
    %37 = math.exp %36 : vector<8x8x2xf32>
    %38 = vector.broadcast %0 : vector<8x8x1xf32> to vector<8x8x2xf32>
    %39 = arith.mulf %37, %38 : vector<8x8x2xf32>
    %cst_15 = arith.constant dense<0.000000e+00> : vector<8x2xf32>
    %40 = vector.multi_reduction <add>, %39, %cst_15 [1] : vector<8x8x2xf32> to vector<8x2xf32>
    %cst_16 = arith.constant 9.99999968E-21 : f32
    %41 = vector.broadcast %cst_16 : f32 to vector<8x2xf32>
    %42 = arith.maximumf %40, %41 : vector<8x2xf32>
    %43 = vector.shape_cast %39 : vector<8x8x2xf32> to vector<64x2xf32>
    %cst_17 = arith.constant dense<0.000000e+00> : vector<64x32xf32>
    %44 = tpu.matmul %43, %9, %cst_17 {dimension_numbers = #tpu.dot_dimension_numbers<[1], [0], [0], [1], [0, 0, 1, 1], [], []>} : vector<64x2xf32>, vector<2x32xf32>, vector<64x32xf32> -> vector<64x32xf32>
    %45 = vector.shape_cast %44 : vector<64x32xf32> to vector<8x8x32xf32>
    %46 = vector.shape_cast %14 : vector<8x32xf32> to vector<1x8x32xf32>
    %47 = vector.broadcast %46 : vector<1x8x32xf32> to vector<8x8x32xf32>
    %48 = arith.mulf %45, %47 : vector<8x8x32xf32>
    %cst_18 = arith.constant dense<0.000000e+00> : vector<8x32xf32>
    %49 = vector.multi_reduction <add>, %48, %cst_18 [1] : vector<8x8x32xf32> to vector<8x32xf32>
    %cst_19 = arith.constant dense<0.000000e+00> : vector<8x32xf32>
    %50 = tpu.matmul %42, %9, %cst_19 {dimension_numbers = #tpu.dot_dimension_numbers<[1], [0], [0], [1], [0, 0, 1, 1], [], []>} : vector<8x2xf32>, vector<2x32xf32>, vector<8x32xf32> -> vector<8x32xf32>
    %51 = arith.divf %49, %50 : vector<8x32xf32>
    %c0_20 = arith.constant 0 : index
    %c0_21 = arith.constant 0 : index
    %52 = vector.load %arg4[%c0_20, %c0_21] : memref<336x128xf32, #tpu.memory_space<vmem>>, vector<1x32xf32>
    %53 = vector.broadcast %52 : vector<1x32xf32> to vector<8x32xf32>
    %54 = arith.mulf %51, %53 : vector<8x32xf32>
    %55 = vector.broadcast %10 : vector<1x32xf32> to vector<8x32xf32>
    %56 = arith.addf %54, %55 : vector<8x32xf32>
    %57 = arith.negf %56 : vector<8x32xf32>
    %58 = math.exp %57 : vector<8x32xf32>
    %cst_22 = arith.constant 1.000000e+00 : f32
    %59 = vector.broadcast %cst_22 : f32 to vector<8x32xf32>
    %60 = arith.addf %59, %58 : vector<8x32xf32>
    %61 = arith.divf %59, %60 : vector<8x32xf32>
    %62 = arith.mulf %56, %61 : vector<8x32xf32>
    %c80 = arith.constant 80 : index
    %c0_23 = arith.constant 0 : index
    %63 = vector.load %arg4[%c80, %c0_23] : memref<336x128xf32, #tpu.memory_space<vmem>>, vector<32x64xf32>
    %c112 = arith.constant 112 : index
    %c0_24 = arith.constant 0 : index
    %64 = vector.load %arg4[%c112, %c0_24] : memref<336x128xf32, #tpu.memory_space<vmem>>, vector<1x64xf32>
    %c120 = arith.constant 120 : index
    %c0_25 = arith.constant 0 : index
    %65 = vector.load %arg4[%c120, %c0_25] : memref<336x128xf32, #tpu.memory_space<vmem>>, vector<32x2xf32>
    %c152 = arith.constant 152 : index
    %c0_26 = arith.constant 0 : index
    %66 = vector.load %arg4[%c152, %c0_26] : memref<336x128xf32, #tpu.memory_space<vmem>>, vector<2x32xf32>
    %c160 = arith.constant 160 : index
    %c0_27 = arith.constant 0 : index
    %67 = vector.load %arg4[%c160, %c0_27] : memref<336x128xf32, #tpu.memory_space<vmem>>, vector<1x32xf32>
    %cst_28 = arith.constant dense<0.000000e+00> : vector<8x64xf32>
    %68 = tpu.matmul %62, %63, %cst_28 {dimension_numbers = #tpu.dot_dimension_numbers<[1], [0], [0], [1], [0, 0, 1, 1], [], []>} : vector<8x32xf32>, vector<32x64xf32>, vector<8x64xf32> -> vector<8x64xf32>
    %69 = vector.broadcast %64 : vector<1x64xf32> to vector<8x64xf32>
    %70 = arith.addf %68, %69 : vector<8x64xf32>
    %71 = vector.extract_strided_slice %70 {offsets = [0, 0], sizes = [8, 32], strides = [1, 1]} : vector<8x64xf32> to vector<8x32xf32>
    %72 = vector.extract_strided_slice %70 {offsets = [0, 32], sizes = [8, 32], strides = [1, 1]} : vector<8x64xf32> to vector<8x32xf32>
    %73 = vector.shape_cast %71 : vector<8x32xf32> to vector<1x8x32xf32>
    %74 = vector.shape_cast %72 : vector<8x32xf32> to vector<8x1x32xf32>
    %75 = vector.broadcast %73 : vector<1x8x32xf32> to vector<8x8x32xf32>
    %76 = vector.broadcast %74 : vector<8x1x32xf32> to vector<8x8x32xf32>
    %77 = arith.addf %75, %76 : vector<8x8x32xf32>
    %cst_29 = arith.constant 0.000000e+00 : f32
    %78 = vector.broadcast %cst_29 : f32 to vector<8x8x32xf32>
    %79 = arith.cmpf ogt, %77, %78 : vector<8x8x32xf32>
    %cst_30 = arith.constant 2.000000e-01 : f32
    %80 = vector.broadcast %cst_30 : f32 to vector<8x8x32xf32>
    %81 = arith.mulf %80, %77 : vector<8x8x32xf32>
    %82 = arith.select %79, %77, %81 : vector<8x8x32xi1>, vector<8x8x32xf32>
    %83 = vector.shape_cast %82 : vector<8x8x32xf32> to vector<64x32xf32>
    %cst_31 = arith.constant dense<0.000000e+00> : vector<64x2xf32>
    %84 = tpu.matmul %83, %65, %cst_31 {dimension_numbers = #tpu.dot_dimension_numbers<[1], [0], [0], [1], [0, 0, 1, 1], [], []>} : vector<64x32xf32>, vector<32x2xf32>, vector<64x2xf32> -> vector<64x2xf32>
    %85 = vector.shape_cast %84 : vector<64x2xf32> to vector<8x8x2xf32>
    %86 = vector.broadcast %0 : vector<8x8x1xf32> to vector<8x8x2xf32>
    %87 = arith.mulf %85, %86 : vector<8x8x2xf32>
    %88 = vector.broadcast %4 : vector<8x8x1xf32> to vector<8x8x2xf32>
    %89 = arith.addf %87, %88 : vector<8x8x2xf32>
    %cst_32 = arith.constant dense<0xFF800000> : vector<8x2xf32>
    %90 = vector.multi_reduction <maximumf>, %89, %cst_32 [1] : vector<8x8x2xf32> to vector<8x2xf32>
    %91 = vector.shape_cast %90 : vector<8x2xf32> to vector<8x1x2xf32>
    %92 = vector.broadcast %91 : vector<8x1x2xf32> to vector<8x8x2xf32>
    %93 = arith.subf %89, %92 : vector<8x8x2xf32>
    %94 = math.exp %93 : vector<8x8x2xf32>
    %95 = vector.broadcast %0 : vector<8x8x1xf32> to vector<8x8x2xf32>
    %96 = arith.mulf %94, %95 : vector<8x8x2xf32>
    %cst_33 = arith.constant dense<0.000000e+00> : vector<8x2xf32>
    %97 = vector.multi_reduction <add>, %96, %cst_33 [1] : vector<8x8x2xf32> to vector<8x2xf32>
    %cst_34 = arith.constant 9.99999968E-21 : f32
    %98 = vector.broadcast %cst_34 : f32 to vector<8x2xf32>
    %99 = arith.maximumf %97, %98 : vector<8x2xf32>
    %100 = vector.shape_cast %96 : vector<8x8x2xf32> to vector<64x2xf32>
    %cst_35 = arith.constant dense<0.000000e+00> : vector<64x32xf32>
    %101 = tpu.matmul %100, %66, %cst_35 {dimension_numbers = #tpu.dot_dimension_numbers<[1], [0], [0], [1], [0, 0, 1, 1], [], []>} : vector<64x2xf32>, vector<2x32xf32>, vector<64x32xf32> -> vector<64x32xf32>
    %102 = vector.shape_cast %101 : vector<64x32xf32> to vector<8x8x32xf32>
    %103 = vector.shape_cast %71 : vector<8x32xf32> to vector<1x8x32xf32>
    %104 = vector.broadcast %103 : vector<1x8x32xf32> to vector<8x8x32xf32>
    %105 = arith.mulf %102, %104 : vector<8x8x32xf32>
    %cst_36 = arith.constant dense<0.000000e+00> : vector<8x32xf32>
    %106 = vector.multi_reduction <add>, %105, %cst_36 [1] : vector<8x8x32xf32> to vector<8x32xf32>
    %cst_37 = arith.constant dense<0.000000e+00> : vector<8x32xf32>
    %107 = tpu.matmul %99, %66, %cst_37 {dimension_numbers = #tpu.dot_dimension_numbers<[1], [0], [0], [1], [0, 0, 1, 1], [], []>} : vector<8x2xf32>, vector<2x32xf32>, vector<8x32xf32> -> vector<8x32xf32>
    %108 = arith.divf %106, %107 : vector<8x32xf32>
    %109 = vector.broadcast %67 : vector<1x32xf32> to vector<8x32xf32>
    %110 = arith.addf %108, %109 : vector<8x32xf32>
    %111 = arith.negf %110 : vector<8x32xf32>
    %112 = math.exp %111 : vector<8x32xf32>
    %cst_38 = arith.constant 1.000000e+00 : f32
    %113 = vector.broadcast %cst_38 : f32 to vector<8x32xf32>
    %114 = arith.addf %113, %112 : vector<8x32xf32>
    %115 = arith.divf %113, %114 : vector<8x32xf32>
    %116 = arith.mulf %110, %115 : vector<8x32xf32>
    %c0_39 = arith.constant 0 : index
    %c0_40 = arith.constant 0 : index
    %117 = vector.load %arg2[%c0_39, %c0_40] : memref<2x8xf32, #tpu.memory_space<vmem>>, vector<2x8xf32>
    %cst_41 = arith.constant dense<0.000000e+00> : vector<2x32xf32>
    %118 = tpu.matmul %117, %116, %cst_41 {dimension_numbers = #tpu.dot_dimension_numbers<[1], [0], [0], [1], [0, 0, 1, 1], [], []>} : vector<2x8xf32>, vector<8x32xf32>, vector<2x32xf32> -> vector<2x32xf32>
    %c0_42 = arith.constant 0 : index
    %c0_43 = arith.constant 0 : index
    %119 = vector.load %arg3[%c0_42, %c0_43] : memref<2x16xf32, #tpu.memory_space<vmem>>, vector<2x16xf32>
    %c168 = arith.constant 168 : index
    %c0_44 = arith.constant 0 : index
    %120 = vector.load %arg4[%c168, %c0_44] : memref<336x128xf32, #tpu.memory_space<vmem>>, vector<16x16xf32>
    %cst_45 = arith.constant dense<0.000000e+00> : vector<2x16xf32>
    %121 = tpu.matmul %119, %120, %cst_45 {dimension_numbers = #tpu.dot_dimension_numbers<[1], [0], [0], [1], [0, 0, 1, 1], [], []>} : vector<2x16xf32>, vector<16x16xf32>, vector<2x16xf32> -> vector<2x16xf32>
    %c184 = arith.constant 184 : index
    %c0_46 = arith.constant 0 : index
    %122 = vector.load %arg4[%c184, %c0_46] : memref<336x128xf32, #tpu.memory_space<vmem>>, vector<1x16xf32>
    %123 = vector.broadcast %122 : vector<1x16xf32> to vector<2x16xf32>
    %124 = arith.addf %121, %123 : vector<2x16xf32>
    %125 = arith.negf %124 : vector<2x16xf32>
    %126 = math.exp %125 : vector<2x16xf32>
    %cst_47 = arith.constant 1.000000e+00 : f32
    %127 = vector.broadcast %cst_47 : f32 to vector<2x16xf32>
    %128 = arith.addf %127, %126 : vector<2x16xf32>
    %129 = arith.divf %127, %128 : vector<2x16xf32>
    %130 = arith.mulf %124, %129 : vector<2x16xf32>
    %c192 = arith.constant 192 : index
    %c0_48 = arith.constant 0 : index
    %131 = vector.load %arg4[%c192, %c0_48] : memref<336x128xf32, #tpu.memory_space<vmem>>, vector<16x16xf32>
    %cst_49 = arith.constant dense<0.000000e+00> : vector<2x16xf32>
    %132 = tpu.matmul %130, %131, %cst_49 {dimension_numbers = #tpu.dot_dimension_numbers<[1], [0], [0], [1], [0, 0, 1, 1], [], []>} : vector<2x16xf32>, vector<16x16xf32>, vector<2x16xf32> -> vector<2x16xf32>
    %c208 = arith.constant 208 : index
    %c0_50 = arith.constant 0 : index
    %133 = vector.load %arg4[%c208, %c0_50] : memref<336x128xf32, #tpu.memory_space<vmem>>, vector<1x16xf32>
    %134 = vector.broadcast %133 : vector<1x16xf32> to vector<2x16xf32>
    %135 = arith.addf %132, %134 : vector<2x16xf32>
    %136 = arith.negf %135 : vector<2x16xf32>
    %137 = math.exp %136 : vector<2x16xf32>
    %cst_51 = arith.constant 1.000000e+00 : f32
    %138 = vector.broadcast %cst_51 : f32 to vector<2x16xf32>
    %139 = arith.addf %138, %137 : vector<2x16xf32>
    %140 = arith.divf %138, %139 : vector<2x16xf32>
    %141 = arith.mulf %135, %140 : vector<2x16xf32>
    %c216 = arith.constant 216 : index
    %c0_52 = arith.constant 0 : index
    %142 = vector.load %arg4[%c216, %c0_52] : memref<336x128xf32, #tpu.memory_space<vmem>>, vector<32x32xf32>
    %cst_53 = arith.constant dense<0.000000e+00> : vector<2x32xf32>
    %143 = tpu.matmul %118, %142, %cst_53 {dimension_numbers = #tpu.dot_dimension_numbers<[1], [0], [0], [1], [0, 0, 1, 1], [], []>} : vector<2x32xf32>, vector<32x32xf32>, vector<2x32xf32> -> vector<2x32xf32>
    %c248 = arith.constant 248 : index
    %c0_54 = arith.constant 0 : index
    %144 = vector.load %arg4[%c248, %c0_54] : memref<336x128xf32, #tpu.memory_space<vmem>>, vector<16x32xf32>
    %cst_55 = arith.constant dense<0.000000e+00> : vector<2x32xf32>
    %145 = tpu.matmul %141, %144, %cst_55 {dimension_numbers = #tpu.dot_dimension_numbers<[1], [0], [0], [1], [0, 0, 1, 1], [], []>} : vector<2x16xf32>, vector<16x32xf32>, vector<2x32xf32> -> vector<2x32xf32>
    %146 = arith.addf %143, %145 : vector<2x32xf32>
    %c264 = arith.constant 264 : index
    %c0_56 = arith.constant 0 : index
    %147 = vector.load %arg4[%c264, %c0_56] : memref<336x128xf32, #tpu.memory_space<vmem>>, vector<1x32xf32>
    %148 = vector.broadcast %147 : vector<1x32xf32> to vector<2x32xf32>
    %149 = arith.addf %146, %148 : vector<2x32xf32>
    %150 = arith.negf %149 : vector<2x32xf32>
    %151 = math.exp %150 : vector<2x32xf32>
    %cst_57 = arith.constant 1.000000e+00 : f32
    %152 = vector.broadcast %cst_57 : f32 to vector<2x32xf32>
    %153 = arith.addf %152, %151 : vector<2x32xf32>
    %154 = arith.divf %152, %153 : vector<2x32xf32>
    %155 = arith.mulf %149, %154 : vector<2x32xf32>
    %c272 = arith.constant 272 : index
    %c0_58 = arith.constant 0 : index
    %156 = vector.load %arg4[%c272, %c0_58] : memref<336x128xf32, #tpu.memory_space<vmem>>, vector<32x16xf32>
    %cst_59 = arith.constant dense<0.000000e+00> : vector<2x16xf32>
    %157 = tpu.matmul %155, %156, %cst_59 {dimension_numbers = #tpu.dot_dimension_numbers<[1], [0], [0], [1], [0, 0, 1, 1], [], []>} : vector<2x32xf32>, vector<32x16xf32>, vector<2x16xf32> -> vector<2x16xf32>
    %c304 = arith.constant 304 : index
    %c0_60 = arith.constant 0 : index
    %158 = vector.load %arg4[%c304, %c0_60] : memref<336x128xf32, #tpu.memory_space<vmem>>, vector<1x16xf32>
    %159 = vector.broadcast %158 : vector<1x16xf32> to vector<2x16xf32>
    %160 = arith.addf %157, %159 : vector<2x16xf32>
    %161 = arith.negf %160 : vector<2x16xf32>
    %162 = math.exp %161 : vector<2x16xf32>
    %cst_61 = arith.constant 1.000000e+00 : f32
    %163 = vector.broadcast %cst_61 : f32 to vector<2x16xf32>
    %164 = arith.addf %163, %162 : vector<2x16xf32>
    %165 = arith.divf %163, %164 : vector<2x16xf32>
    %166 = arith.mulf %160, %165 : vector<2x16xf32>
    %c312 = arith.constant 312 : index
    %c0_62 = arith.constant 0 : index
    %167 = vector.load %arg4[%c312, %c0_62] : memref<336x128xf32, #tpu.memory_space<vmem>>, vector<16x2xf32>
    %cst_63 = arith.constant dense<0.000000e+00> : vector<2x2xf32>
    %168 = tpu.matmul %166, %167, %cst_63 {dimension_numbers = #tpu.dot_dimension_numbers<[1], [0], [0], [1], [0, 0, 1, 1], [], []>} : vector<2x16xf32>, vector<16x2xf32>, vector<2x2xf32> -> vector<2x2xf32>
    %c328 = arith.constant 328 : index
    %c0_64 = arith.constant 0 : index
    %169 = vector.load %arg4[%c328, %c0_64] : memref<336x128xf32, #tpu.memory_space<vmem>>, vector<1x2xf32>
    %170 = vector.broadcast %169 : vector<1x2xf32> to vector<2x2xf32>
    %171 = arith.addf %168, %170 : vector<2x2xf32>
    %c0_65 = arith.constant 0 : index
    %c0_66 = arith.constant 0 : index
    %172 = vector.load %arg5[%c0_65, %c0_66] : memref<2x2xf32, #tpu.memory_space<vmem>>, vector<2x2xf32>
    tpu.vector_store %arg5[%c0_65, %c0_66], %171 {strides = array<i32>} : memref<2x2xf32, #tpu.memory_space<vmem>>, vector<2x2xf32>,
    return
  }
}

</mosaic_0001>

<bundles_post_ra>
// kernel: tpu_custom_call.1
= control target key start
LH: loop header
LB: loop body
LE: loop exit
PB: predicated region body
PF: predicated region fallthrough
CT: control target
= control target key end

     0   :  { %10 = vsyncpa [#allocation3], 0  ;;  %s3608_s0 = inlined_call_operand.vmem [shape: f32[8,16], index: 0, kind: input, shape index: {}]   ;;  %s3609_s1 = inlined_call_operand.vmem [shape: f32[8,8,1], index: 1, kind: input, shape index: {}]   ;;  %s3610_s2 = inlined_call_operand.vmem [shape: f32[2,8], index: 2, kind: input, shape index: {}]   ;;  %s3611_s3 = inlined_call_operand.vmem [shape: f32[2,16], index: 3, kind: input, shape index: {}]   ;;  %s3612_s4 = inlined_call_operand.hbm [shape: f32[336,128], index: 4, kind: input, shape index: {}]   ;;  %s3613_s5 = inlined_call_operand.hbm [shape: f32[2,2], index: 5, kind: output, shape index: {}]  }
   0x1   :  { %11 = vsyncpa [#allocation4], 0  ;;  %s3124_s18 = smov [#allocation2]  }
   0x2   :  { %s25_s19 = sshll.u32 %s3124_s18, 4  ;;  %s26_s19 = int_to_ptr.vmem [resolvable:$true] %s25_s19 }
   0x3   :  { %s3088_s20 = scalar_lea.vmem %s26_s19, 5376  ;;  %p3093_p1 = scmp.lt.s32.totalorder %s26_s19, %s26_s19 }
   0x4   :  { %p3089_p0 = scmp.ne.s32.totalorder %s26_s19, %s3088_s20  ;;  %p3094_p2 = scmp.lt.s32.totalorder %s3088_s20, %s3088_s20 }
   0x6   :  { %p3095_p3 = por %p3094_p2, %p3093_p1 }
   0x8   :  { %p3096_p4 = pnand %p3095_p3, %p3089_p0 }
   0xa   :  { %3099 = shalt.err (!%p3096_p4)
}
   0xb   :  { %s3125_s21 = smov 128   ;;  %s3126_s22 = smov 8  }
   0xc   :  { %31 = dma.hbm_to_vmem [thread:$0]  %s3612_s4, 5376, %s26_s19, [#allocation3], %s3125_s21, %s3125_s21, %s3126_s22  }
   0xd   :  { %3120 = dma.done.wait [#allocation3], 5376  }
   0xe   :  { %3121 = vsyncadd [#allocation3], 4294961920  ;;  %v3127_v0 = vmov 0.0   ;;  %vm3128_vm0 = vmmov 0   ;;  %v61_v1 = vld [vmem:[#allocation2 + $0x10] sm:$0xff]  ;;  %v60_v2 = vld [vmem:[#allocation2 + $0x8] sm:$0xff]  ;;  %v152_v6 = vlaneseq }
   0xf   :  { %2774 = vmatprep.subr.mxu0 %v3127_v0  ;;  %2778 = vmatprep.mubr.msk.f32.mxu0 %vm3128_vm0, %v3127_v0  ;;  %v59_v3 = vld [vmem:[%s3608_s0] sm:$0xff]  ;;  %vm3614_vm1 = vcmask 130048   ;;  %v3129_v4 = vmov 1966171168   ;;  %v66_v9 = vld [vmem:[#allocation2 + $0x38] sm:$0xff]  ;;  %v65_v12 = vld [vmem:[#allocation2 + $0x30] sm:$0xff] }
  0x10   :  { %2775 = vmatpush3.msra.mxu0 %v61_v1  ;;  %v150_v5 = vunpack.c.l.s4 %v3129_v4  ;;  %v153_v8 = vshrl.u32 %v152_v6, 7  ;;  %2781 = vmatprep.subr.mxu1 %v66_v9  ;;  %v2619_v10 = vld [vmem:[#allocation2 + $0x18] ss:$0 sm:$0xff]  ;;  %v64_v15 = vld [vmem:[#allocation2 + $0x28] sm:$0xff]  ;;  %v63_v20 = vld [vmem:[#allocation2 + $0x20] sm:$0xff]  ;;  %s3130_s0 = smov 96  }
  0x11   :  { %2776 = vmatprep.subr.mxu0 %v3127_v0  ;;  %2782 = vmatpush3.msra.mxu1 %v66_v9  ;;  %v3131_v38 = vmov 0   ;;  %v35_v41 = vld [vmem:[%s3609_s1] sm:$0xff]  ;;  %v36_v42 = vld [vmem:[%s3609_s1 + $0x8] sm:$0xff]  ;;  %v38_v44 = vld [vmem:[%s3609_s1 + $0x18] sm:$0xff]  ;;  %vm285_vm3 = vcmask 261120   ;;  %vm688_vm11 = vcmask 1041408  }
  0x12   :  { %2777 = vmatpush3.msra.mxu0 %v60_v2  ;;  %v151_v7 = vunpack.c.0.s8 %v150_v5  ;;  %2783 = vmatprep.subr.mxu1 %v65_v12  ;;  %v3180_v18 = vsub.s32 0, %v153_v8  ;;  %v44_v43 = vsub.f32 1.0, %v36_v42  ;;  %v43_v45 = vsub.f32 1.0, %v35_v41  ;;  %v37_v46 = vld [vmem:[%s3609_s1 + $0x10] sm:$0xff]  ;;  %v39_v52 = vld [vmem:[%s3609_s1 + $0x20] sm:$0xff]  ;;  %v40_v55 = vld [vmem:[%s3609_s1 + $0x28] sm:$0xff] }
  0x13   :  { %2779 = vmatmul.mubr.msk.f32.vlgmr.msra.gmra.mxu0 %vm3614_vm1, %v59_v3  ;;  %2784 = vmatpush3.msra.mxu1 %v65_v12  ;;  %v45_v48 = vsub.f32 1.0, %v37_v46  ;;  %v46_v51 = vsub.f32 1.0, %v38_v44  ;;  %v47_v54 = vsub.f32 1.0, %v39_v52  ;;  %v48_v57 = vsub.f32 1.0, %v40_v55  ;;  %v42_v58 = vld [vmem:[%s3609_s1 + $0x38] sm:$0xff]  ;;  %v41_v59 = vld [vmem:[%s3609_s1 + $0x30] sm:$0xff] }
  0x14   :  { %v3174_v11 = vsub.s32 %v151_v7, %v153_v8  ;;  %2785 = vmatprep.subr.mxu1 %v64_v15  ;;  %2935 = vset.pattern.permute.xlu1 %v3131_v38  ;;  %v52_v47 = vmul.f32 -1e+30, %v44_v43  ;;  %v51_v49 = vmul.f32 -1e+30, %v43_v45  ;;  %v50_v61 = vsub.f32 1.0, %v42_v58 }
  0x15   :  { %2786 = vmatpush3.msra.mxu1 %v64_v15  ;;  %2934 = vset.pattern.permute.xlu0 %v3131_v38  ;;  %v53_v50 = vmul.f32 -1e+30, %v45_v48  ;;  %v54_v53 = vmul.f32 -1e+30, %v46_v51  ;;  %v55_v56 = vmul.f32 -1e+30, %v47_v54 }
  0x16   :  { %2787 = vmatprep.subr.mxu1 %v63_v20  ;;  %v56_v60 = vmul.f32 -1e+30, %v48_v57  ;;  %v49_v62 = vsub.f32 1.0, %v41_v59  ;;  %v58_v63 = vmul.f32 -1e+30, %v50_v61  ;;  %vm511_vm12 = vcmask 15360  }
  0x17   :  { %2788 = vmatpush3.msra.mxu1 %v63_v20  ;;  %vm869_vm13 = vcmask 1041409   ;;  %vm871_vm14 = vcmask 1042434   ;;  %vm873_vm15 = vcmask 1043459  }
  0x18   :  { %2820 = vmatprep.subr.mxu1 %v3127_v0  ;;  %v57_v1 = vmul.f32 -1e+30, %v49_v62 }
  0xd3   :  { %v143_v13 = vpop.f32.mrf.mxu0 }
  0xd4   :  { %v3176_v14 = vadd.f32 %v2619_v10, %v143_v13 }
  0xd5   :  { %v2780_v16 = vpop.f32.mrf.mxu0 }
  0xd6   :  { %v155_v17 = vrot.slane %v3176_v14, %v3174_v11  ;;  %v148_v19 = vcombine.high %v3176_v14, %v3176_v14 }
  0xd8   :  { %v171_v21 = vrot.slane %v155_v17, %v3174_v11  ;;  %v163_v22 = vcombine.high %v155_v17, %v155_v17  ;;  %v162_v23 = vrot.slane %v148_v19, %v3174_v11 }
  0xda   :  { %v200_v24 = vrot.slane %v171_v21, %v3180_v18  ;;  %v193_v25 = vcombine.high %v171_v21, %v171_v21  ;;  %v185_v26 = vrot.slane %v163_v22, %v3174_v11  ;;  %v164_v29 = vcombine.high %v162_v23, %v162_v23 }
  0xdb   :  { %v178_v31 = vrot.slane %v162_v23, %v3174_v11 }
  0xdc   :  { %229 = vrot.lane.b32.xlu0 %v200_v24, %s3130_s0  ;;  %v208_v27 = vrot.slane %v193_v25, %v3180_v18  ;;  %v195_v28 = vcombine.high %v185_v26, %v185_v26  ;;  %v204_v30 = vrot.slane %v185_v26, %v3180_v18  ;;  %v192_v33 = vrot.slane %v164_v29, %v3174_v11 }
  0xdd   :  { %v216_v34 = vrot.slane %v178_v31, %v3180_v18  ;;  %v194_v35 = vcombine.high %v178_v31, %v178_v31 }
  0xde   :  { %233 = vrot.lane.b32.xlu1 %v208_v27, %s3130_s0  ;;  %v212_v32 = vrot.slane %v195_v28, %v3180_v18  ;;  %v220_v36 = vrot.slane %v192_v33, %v3180_v18  ;;  %v196_v37 = vcombine.high %v192_v33, %v192_v33 }
  0xdf   :  { %v224_v39 = vrot.slane %v194_v35, %v3180_v18 }
  0xe0   :  { %231 = vrot.lane.b32.xlu0 %v204_v30, %s3130_s0  ;;  %v228_v40 = vrot.slane %v196_v37, %v3180_v18  ;;  %v3248_v37 = vld [vmem:[#allocation2 + $0x40] sm:$0x3] }
  0xe1   :  { %2801 = vmatprep.subr.msk.mxu0 %vm688_vm11, %v3248_v37 }
  0xe2   :  { %235 = vrot.lane.b32.xlu1 %v212_v32, %s3130_s0  ;;  %2802 = vmatpush3.msk.msra.mxu0 %vm688_vm11, %v3248_v37 }
  0xe3   :  { %2815 = vmatprep.subr.mxu0 %v3127_v0 }
  0xe4   :  { %237 = vrot.lane.b32.xlu0 %v216_v34, %s3130_s0 }
  0xe6   :  { %239 = vrot.lane.b32.xlu1 %v220_v36, %s3130_s0 }
  0xe8   :  { %241 = vrot.lane.b32.xlu0 %v224_v39, %s3130_s0 }
  0xea   :  { %243 = vrot.lane.b32.xlu1 %v228_v40, %s3130_s0 }
  0xec   :  { %417 = vperm.xlu0 %2934, %v35_v41  }
  0xee   :  { %422 = vperm.xlu1 %2935, %v36_v42  }
  0xf0   :  { %432 = vperm.xlu0 %2934, %v38_v44  }
  0xf2   :  { %427 = vperm.xlu1 %2935, %v37_v46  }
  0xf4   :  { %470 = vperm.xlu0 %2934, %v52_v47  }
  0xf6   :  { %465 = vperm.xlu1 %2935, %v51_v49  }
  0xf8   :  { %475 = vperm.xlu0 %2934, %v53_v50  }
  0xfa   :  { %437 = vperm.xlu1 %2935, %v39_v52  }
  0xfc   :  { %480 = vperm.xlu0 %2934, %v54_v53  }
  0xfe   :  { %442 = vperm.xlu1 %2935, %v40_v55  }
 0x100   :  { %485 = vperm.xlu0 %2934, %v55_v56  }
 0x102   :  { %447 = vperm.xlu1 %2935, %v41_v59  }
 0x104   :  { %490 = vperm.xlu0 %2934, %v56_v60  }
 0x106   :  { %452 = vperm.xlu1 %2935, %v42_v58  }
 0x108   :  { %500 = vperm.xlu0 %2934, %v58_v63  }
 0x10a   :  { %495 = vperm.xlu1 %2935, %v57_v1  }
 0x14e   :  { %v230_v2 = vpop.permute.xlu0 %229 }
 0x14f   :  { %v253_v3 = vadd.f32 %v230_v2, %v3176_v14 }
 0x150   :  { %v234_v4 = vpop.permute.xlu1 %233 }
 0x151   :  { %v255_v5 = vadd.f32 %v234_v4, %v3176_v14  ;;  %vm261_vm2 = vcmp.gt.f32.partialorder %v253_v3, 0.0  ;;  %v269_v6 = vmul.f32 0.2, %v253_v3 }
 0x152   :  { %v232_v7 = vpop.permute.xlu0 %231 }
 0x153   :  { %v254_v8 = vadd.f32 %v232_v7, %v3176_v14  ;;  %v277_v9 = vsel %vm261_vm2, %v253_v3, %v269_v6  ;;  %v271_v10 = vmul.f32 0.2, %v255_v5  ;;  %vm263_vm4 = vcmp.gt.f32.partialorder %v255_v5, 0.0 }
 0x154   :  { %2789 = vmatprep.mubr.msk.f32.mxu1 %vm285_vm3, %v277_v9  ;;  %v236_v12 = vpop.permute.xlu1 %235  ;;  %vm875_vm2 = vcmask 1044484  }
 0x155   :  { %vm262_vm5 = vcmp.gt.f32.partialorder %v254_v8, 0.0  ;;  %v270_v13 = vmul.f32 0.2, %v254_v8  ;;  %v256_v15 = vadd.f32 %v236_v12, %v3176_v14  ;;  %v279_v22 = vsel %vm263_vm4, %v255_v5, %v271_v10 }
 0x156   :  { %v238_v16 = vpop.permute.xlu0 %237  ;;  %vm877_vm4 = vcmask 1045509  }
 0x157   :  { %v272_v17 = vmul.f32 0.2, %v256_v15  ;;  %v257_v19 = vadd.f32 %v238_v16, %v3176_v14  ;;  %v278_v20 = vsel %vm262_vm5, %v254_v8, %v270_v13  ;;  %vm264_vm6 = vcmp.gt.f32.partialorder %v256_v15, 0.0 }
 0x158   :  { %2790 = vmatmul.mubr.msk.f32.vlgmr.msra.gmra.mxu1 %vm285_vm3, %v278_v20  ;;  %v240_v21 = vpop.permute.xlu1 %239  ;;  %vm879_vm5 = vcmask 1046534  }
 0x159   :  { %vm265_vm7 = vcmp.gt.f32.partialorder %v257_v19, 0.0  ;;  %v273_v23 = vmul.f32 0.2, %v257_v19  ;;  %v258_v24 = vadd.f32 %v240_v21, %v3176_v14  ;;  %2792 = vmatprep.mubr.msk.f32.mxu1 %vm285_vm3, %v279_v22  ;;  %v280_v28 = vsel %vm264_vm6, %v256_v15, %v272_v17 }
 0x15a   :  { %v242_v25 = vpop.permute.xlu0 %241  ;;  %vm881_vm6 = vcmask 1047559  }
 0x15b   :  { %v274_v26 = vmul.f32 0.2, %v258_v24  ;;  %v259_v27 = vadd.f32 %v242_v25, %v3176_v14  ;;  %v281_v29 = vsel %vm265_vm7, %v257_v19, %v273_v23  ;;  %vm266_vm8 = vcmp.gt.f32.partialorder %v258_v24, 0.0 }
 0x15c   :  { %2793 = vmatmul.mubr.msk.f32.gmra.mxu1 %vm285_vm3, %v280_v28  ;;  %v244_v30 = vpop.permute.xlu1 %243 }
 0x15d   :  { %vm267_vm9 = vcmp.gt.f32.partialorder %v259_v27, 0.0  ;;  %v275_v31 = vmul.f32 0.2, %v259_v27  ;;  %v260_v32 = vadd.f32 %v244_v30, %v3176_v14  ;;  %2795 = vmatprep.mubr.msk.f32.mxu1 %vm285_vm3, %v281_v29  ;;  %v282_v34 = vsel %vm266_vm8, %v258_v24, %v274_v26 }
 0x15f   :  { %v276_v33 = vmul.f32 0.2, %v260_v32  ;;  %v283_v35 = vsel %vm267_vm9, %v259_v27, %v275_v31  ;;  %vm268_vm10 = vcmp.gt.f32.partialorder %v260_v32, 0.0 }
 0x160   :  { %2796 = vmatmul.mubr.msk.f32.gmra.mxu1 %vm285_vm3, %v282_v34 }
 0x161   :  { %2798 = vmatprep.mubr.msk.f32.mxu1 %vm285_vm3, %v283_v35  ;;  %v284_v36 = vsel %vm268_vm10, %v260_v32, %v276_v33 }
 0x164   :  { %2799 = vmatmul.mubr.msk.f32.gmra.mxu1 %vm285_vm3, %v284_v36 }
 0x165   :  { %2828 = vmatprep.mubr.msk.f32.mxu1 %vm3128_vm0, %v3127_v0 }
 0x167   :  { %v3255_v38 = vpop.permute.xlu0 %417 }
 0x169   :  { %v3257_v39 = vpop.permute.xlu1 %422 }
 0x16b   :  { %v3259_v40 = vpop.permute.xlu0 %432 }
 0x16d   :  { %v3261_v41 = vpop.permute.xlu1 %427 }
 0x16f   :  { %v3263_v42 = vpop.permute.xlu0 %470 }
 0x171   :  { %v3265_v43 = vpop.permute.xlu1 %465 }
 0x173   :  { %v3267_v44 = vpop.permute.xlu0 %475 }
 0x175   :  { %v3269_v45 = vpop.permute.xlu1 %437 }
 0x177   :  { %v3271_v46 = vpop.permute.xlu0 %480 }
 0x179   :  { %v3273_v47 = vpop.permute.xlu1 %442 }
 0x17b   :  { %v3276_v50 = vpop.permute.xlu0 %485 }
 0x17d   :  { %v3280_v54 = vpop.permute.xlu1 %447 }
 0x17f   :  { %v3293_v1 = vpop.permute.xlu0 %490 }
 0x181   :  { %v3301_v8 = vpop.permute.xlu1 %452 }
 0x183   :  { %v3315_v27 = vpop.permute.xlu0 %500 }
 0x218   :  { %v2791_v48 = vpop.f32.mrf.mxu1 }
 0x219   :  { %v456_v49 = vmul.f32 %v2791_v48, %v3257_v39  ;;  %v3321_v48 = vpop.permute.xlu1 %495 }
 0x21a   :  { %v376_v51 = vpop.f32.mrf.mxu1 }
 0x21b   :  { %v504_v52 = vadd.f32 %v3263_v42, %v456_v49  ;;  %v455_v53 = vmul.f32 %v3255_v38, %v376_v51 }
 0x21c   :  { %v2794_v55 = vpop.f32.mrf.mxu1 }
 0x21d   :  { %v519_v56 = vsel %vm511_vm12, %v504_v52, -inf  ;;  %v3284_v57 = vadd.f32 %v3265_v43, %v455_v53  ;;  %v458_v58 = vmul.f32 %v2794_v55, %v3259_v40 }
 0x21e   :  { %v520_v59 = vrot.slane %v519_v56, 4  ;;  %v386_v60 = vpop.f32.mrf.mxu1 }
 0x21f   :  { %v512_v61 = vsel %vm511_vm12, %v3284_v57, -inf  ;;  %v3290_v62 = vadd.f32 %v3271_v46, %v458_v58  ;;  %v457_v63 = vmul.f32 %v3261_v41, %v386_v60 }
 0x220   :  { %v521_v2 = vmax.f32 %v519_v56, %v520_v59  ;;  %v513_v3 = vrot.slane %v512_v61, 4  ;;  %v2797_v4 = vpop.f32.mrf.mxu1 }
 0x221   :  { %v533_v5 = vsel %vm511_vm12, %v3290_v62, -inf  ;;  %v3298_v6 = vadd.f32 %v3267_v44, %v457_v63  ;;  %v460_v7 = vmul.f32 %v2797_v4, %v3273_v47 }
 0x222   :  { %v522_v9 = vrot.slane %v521_v2, 2  ;;  %v514_v10 = vmax.f32 %v512_v61, %v513_v3  ;;  %v534_v12 = vrot.slane %v533_v5, 4  ;;  %v396_v13 = vpop.f32.mrf.mxu1 }
 0x223   :  { %v526_v15 = vsel %vm511_vm12, %v3298_v6, -inf  ;;  %v3306_v16 = vadd.f32 %v3293_v1, %v460_v7  ;;  %v459_v17 = vmul.f32 %v3269_v45, %v396_v13 }
 0x224   :  { %v523_v19 = vmax.f32 %v521_v2, %v522_v9  ;;  %v515_v20 = vrot.slane %v514_v10, 2  ;;  %v535_v21 = vmax.f32 %v533_v5, %v534_v12  ;;  %v527_v22 = vrot.slane %v526_v15, 4  ;;  %v2800_v23 = vpop.f32.mrf.mxu1 }
 0x225   :  { %v547_v24 = vsel %vm511_vm12, %v3306_v16, -inf  ;;  %v3312_v25 = vadd.f32 %v3276_v50, %v459_v17  ;;  %v462_v26 = vmul.f32 %v2800_v23, %v3301_v8 }
 0x226   :  { %v524_v28 = vrot.slane %v523_v19, 1  ;;  %v516_v29 = vmax.f32 %v514_v10, %v515_v20  ;;  %v536_v30 = vrot.slane %v535_v21, 2  ;;  %v528_v31 = vmax.f32 %v526_v15, %v527_v22  ;;  %v406_v32 = vpop.f32.mrf.mxu1 }
 0x227   :  { %v548_v33 = vrot.slane %v547_v24, 4  ;;  %v540_v34 = vsel %vm511_vm12, %v3312_v25, -inf  ;;  %v510_v35 = vadd.f32 %v3315_v27, %v462_v26  ;;  %v461_v36 = vmul.f32 %v3280_v54, %v406_v32 }
 0x228   :  { %v525_v49 = vmax.f32 %v523_v19, %v524_v28  ;;  %v517_v51 = vrot.slane %v516_v29, 1  ;;  %v537_v53 = vmax.f32 %v535_v21, %v536_v30  ;;  %v529_v55 = vrot.slane %v528_v31, 2 }
 0x229   :  { %v549_v56 = vmax.f32 %v547_v24, %v548_v33  ;;  %v541_v58 = vrot.slane %v540_v34, 4  ;;  %v561_v59 = vsel %vm511_vm12, %v510_v35, -inf  ;;  %v509_v60 = vadd.f32 %v3321_v48, %v461_v36 }
 0x22a   :  { %v569_v61 = vsub.f32 %v504_v52, %v525_v49  ;;  %v518_v63 = vmax.f32 %v516_v29, %v517_v51  ;;  %v538_v2 = vrot.slane %v537_v53, 1  ;;  %v530_v3 = vmax.f32 %v528_v31, %v529_v55 }
 0x22b   :  { %v550_v4 = vrot.slane %v549_v56, 2  ;;  %v542_v5 = vmax.f32 %v540_v34, %v541_v58  ;;  %v562_v7 = vrot.slane %v561_v59, 4  ;;  %v554_v9 = vsel %vm511_vm12, %v509_v60, -inf }
 0x22c   :  { %v578_v10 = vmul.f32 1.442695, %v569_v61  ;;  %v568_v12 = vsub.f32 %v3284_v57, %v518_v63  ;;  %v539_v13 = vmax.f32 %v537_v53, %v538_v2  ;;  %v531_v15 = vrot.slane %v530_v3, 1 }
 0x22d   :  { %v551_v17 = vmax.f32 %v549_v56, %v550_v4  ;;  %v543_v19 = vrot.slane %v542_v5, 2  ;;  %v563_v20 = vmax.f32 %v561_v59, %v562_v7  ;;  %v555_v21 = vrot.slane %v554_v9, 4 }
 0x22e   :  { %2936 = vpow2.f32 %v578_v10  ;;  %v576_v22 = vmul.f32 1.442695, %v568_v12  ;;  %v571_v52 = vsub.f32 %v3290_v62, %v539_v13  ;;  %v532_v23 = vmax.f32 %v530_v3, %v531_v15 }
 0x22f   :  { %v552_v24 = vrot.slane %v551_v17, 1  ;;  %v544_v26 = vmax.f32 %v542_v5, %v543_v19  ;;  %v564_v28 = vrot.slane %v563_v20, 2  ;;  %v556_v29 = vmax.f32 %v554_v9, %v555_v21 }
 0x230   :  { %2938 = vpow2.f32 %v576_v22  ;;  %v582_v30 = vmul.f32 1.442695, %v571_v52  ;;  %v570_v31 = vsub.f32 %v3298_v6, %v532_v23 }
 0x231   :  { %v553_v57 = vmax.f32 %v551_v17, %v552_v24  ;;  %v545_v32 = vrot.slane %v544_v26, 1  ;;  %v565_v33 = vmax.f32 %v563_v20, %v564_v28  ;;  %v557_v34 = vrot.slane %v556_v29, 2 }
 0x232   :  { %2940 = vpow2.f32 %v582_v30  ;;  %v580_v36 = vmul.f32 1.442695, %v570_v31 }
 0x233   :  { %v573_v49 = vsub.f32 %v3306_v16, %v553_v57  ;;  %v546_v51 = vmax.f32 %v544_v26, %v545_v32  ;;  %v566_v53 = vrot.slane %v565_v33, 1  ;;  %v558_v62 = vmax.f32 %v556_v29, %v557_v34 }
 0x234   :  { %2942 = vpow2.f32 %v580_v36 }
 0x235   :  { %v586_v55 = vmul.f32 1.442695, %v573_v49  ;;  %v572_v56 = vsub.f32 %v3312_v25, %v546_v51  ;;  %v567_v58 = vmax.f32 %v565_v33, %v566_v53  ;;  %v559_v59 = vrot.slane %v558_v62, 1 }
 0x237   :  { %2944 = vpow2.f32 %v586_v55  ;;  %v584_v61 = vmul.f32 1.442695, %v572_v56  ;;  %v575_v6 = vsub.f32 %v510_v35, %v567_v58  ;;  %v560_v63 = vmax.f32 %v558_v62, %v559_v59 }
 0x239   :  { %2946 = vpow2.f32 %v584_v61  ;;  %v590_v2 = vmul.f32 1.442695, %v575_v6  ;;  %v574_v3 = vsub.f32 %v509_v60, %v560_v63 }
 0x23b   :  { %v2937_v4 = vpop.eup %2936  ;;  %2948 = vpow2.f32 %v590_v2  ;;  %v588_v5 = vmul.f32 1.442695, %v574_v3 }
 0x23c   :  { %v593_v16 = vmul.f32 %v2937_v4, %v3257_v39 }
 0x23d   :  { %v2939_v7 = vpop.eup %2938  ;;  %2950 = vpow2.f32 %v588_v5 }
 0x23e   :  { %v592_v9 = vmul.f32 %v2939_v7, %v3255_v38  ;;  %v607_v25 = vsel %vm511_vm12, %v593_v16, 0.0 }
 0x23f   :  { %v2941_v10 = vpop.eup %2940  ;;  %v608_v12 = vrot.slane %v607_v25, 4 }
 0x240   :  { %v600_v13 = vsel %vm511_vm12, %v592_v9, 0.0  ;;  %2803 = vmatprep.mubr.msk.f32.mxu0 %vm511_vm12, %v592_v9  ;;  %v595_v35 = vmul.f32 %v2941_v10, %v3259_v40 }
 0x241   :  { %v2943_v60 = vpop.eup %2942  ;;  %v601_v15 = vrot.slane %v600_v13, 4  ;;  %v609_v17 = vadd.f32 %v608_v12, %v607_v25  ;;  %2804 = vmatmul.mubr.msk.f32.vlgmr.msra.gmra.mxu0 %vm511_vm12, %v593_v16 }
 0x242   :  { %v594_v19 = vmul.f32 %v2943_v60, %v3261_v41  ;;  %v621_v20 = vsel %vm511_vm12, %v595_v35, 0.0  ;;  %2816 = vmatpush3.msk.msra.mxu0 %vm688_vm11, %v3248_v37 }
 0x243   :  { %v602_v21 = vadd.f32 %v601_v15, %v600_v13  ;;  %v610_v22 = vrot.slane %v609_v17, 2  ;;  %v622_v52 = vrot.slane %v621_v20, 4 }
 0x244   :  { %v2945_v23 = vpop.eup %2944  ;;  %v614_v24 = vsel %vm511_vm12, %v594_v19, 0.0  ;;  %2806 = vmatprep.mubr.msk.f32.mxu0 %vm511_vm12, %v594_v19 }
 0x245   :  { %v603_v26 = vrot.slane %v602_v21, 2  ;;  %v615_v28 = vrot.slane %v614_v24, 4  ;;  %v623_v29 = vadd.f32 %v622_v52, %v621_v20  ;;  %2807 = vmatmul.mubr.msk.f32.gmra.mxu0 %vm511_vm12, %v595_v35  ;;  %v597_v31 = vmul.f32 %v2945_v23, %v3273_v47 }
 0x246   :  { %v2947_v30 = vpop.eup %2946  ;;  %v611_v32 = vadd.f32 %v610_v22, %v609_v17 }
 0x247   :  { %v604_v57 = vadd.f32 %v603_v26, %v602_v21  ;;  %v616_v33 = vadd.f32 %v615_v28, %v614_v24  ;;  %v624_v37 = vrot.slane %v623_v29, 2  ;;  %v596_v36 = vmul.f32 %v2947_v30, %v3269_v45 }
 0x248   :  { %v2949_v34 = vpop.eup %2948  ;;  %v635_v49 = vsel %vm511_vm12, %v597_v31, 0.0  ;;  %v612_v59 = vrot.slane %v611_v32, 1 }
 0x249   :  { %v605_v51 = vrot.slane %v604_v57, 1  ;;  %v617_v53 = vrot.slane %v616_v33, 2  ;;  %v628_v55 = vsel %vm511_vm12, %v596_v36, 0.0  ;;  %2809 = vmatprep.mubr.msk.f32.mxu0 %vm511_vm12, %v596_v36  ;;  %v636_v56 = vrot.slane %v635_v49, 4 }
 0x24a   :  { %v2951_v62 = vpop.eup %2950  ;;  %v599_v58 = vmul.f32 %v2949_v34, %v3301_v8  ;;  %v625_v6 = vadd.f32 %v624_v37, %v623_v29  ;;  %2810 = vmatmul.mubr.msk.f32.gmra.mxu0 %vm511_vm12, %v597_v31  ;;  %v629_v63 = vrot.slane %v628_v55, 4  ;;  %v613_v12 = vadd.f32 %v612_v59, %v611_v32 }
 0x24b   :  { %v618_v61 = vadd.f32 %v617_v53, %v616_v33  ;;  %v637_v2 = vadd.f32 %v636_v56, %v635_v49  ;;  %v598_v3 = vmul.f32 %v2951_v62, %v3280_v54  ;;  %v606_v5 = vadd.f32 %v605_v51, %v604_v57 }
 0x24c   :  { %v649_v4 = vsel %vm511_vm12, %v599_v58, 0.0  ;;  %v630_v9 = vadd.f32 %v629_v63, %v628_v55  ;;  %v626_v35 = vrot.slane %v625_v6, 1  ;;  %v657_v26 = vmax.f32 %v613_v12, 1e-20 }
 0x24d   :  { %v619_v16 = vrot.slane %v618_v61, 1  ;;  %v650_v7 = vrot.slane %v649_v4, 4  ;;  %v638_v25 = vrot.slane %v637_v2, 2  ;;  %v642_v10 = vsel %vm511_vm12, %v598_v3, 0.0  ;;  %2812 = vmatprep.mubr.msk.f32.mxu0 %vm511_vm12, %v598_v3 }
 0x24e   :  { %v643_v60 = vrot.slane %v642_v10, 4  ;;  %2813 = vmatmul.mubr.msk.f32.gmra.mxu0 %vm511_vm12, %v599_v58  ;;  %v631_v15 = vrot.slane %v630_v9, 2  ;;  %v656_v20 = vmax.f32 %v606_v5, 1e-20  ;;  %v627_v28 = vadd.f32 %v626_v35, %v625_v6  ;;  %v1070_v5 = vld [vmem:[#allocation2 + $0x60] sm:$0xff] }
 0x24f   :  { %v620_v13 = vadd.f32 %v619_v16, %v618_v61  ;;  %v639_v17 = vadd.f32 %v638_v25, %v637_v2  ;;  %v651_v19 = vadd.f32 %v650_v7, %v649_v4  ;;  %2817 = vmatprep.mubr.msk.f32.mxu0 %vm3128_vm0, %v3127_v0  ;;  %v1071_v4 = vld [vmem:[#allocation2 + $0x68] sm:$0xff]  ;;  %v1069_v16 = vld [vmem:[#allocation2 + $0x58] sm:$0xff]  ;;  %v1068_v7 = vld [vmem:[#allocation2 + $0x50] sm:$0xff] }
 0x250   :  { %v644_v21 = vadd.f32 %v643_v60, %v642_v10  ;;  %v632_v52 = vadd.f32 %v631_v15, %v630_v9  ;;  %v870_v57 = vsel %vm869_vm13, %v657_v26, %v656_v20  ;;  %v659_v49 = vmax.f32 %v627_v28, 1e-20  ;;  %2821 = vmatpush3.msra.mxu1 %v1071_v4 }
 0x251   :  { %v658_v22 = vmax.f32 %v620_v13, 1e-20  ;;  %v640_v23 = vrot.slane %v639_v17, 1  ;;  %v652_v24 = vrot.slane %v651_v19, 2  ;;  %2822 = vmatprep.subr.mxu1 %v3127_v0 }
 0x252   :  { %v645_v29 = vrot.slane %v644_v21, 2  ;;  %v633_v30 = vrot.slane %v632_v52, 1  ;;  %2823 = vmatpush3.msra.mxu1 %v1070_v5 }
 0x253   :  { %v653_v31 = vadd.f32 %v652_v24, %v651_v19  ;;  %v872_v33 = vsel %vm871_vm14, %v658_v22, %v870_v57  ;;  %v641_v34 = vadd.f32 %v640_v23, %v639_v17  ;;  %2824 = vmatprep.subr.mxu1 %v3127_v0 }
 0x254   :  { %v646_v32 = vadd.f32 %v645_v29, %v644_v21  ;;  %v634_v37 = vadd.f32 %v633_v30, %v632_v52  ;;  %v874_v56 = vsel %vm873_vm15, %v659_v49, %v872_v33  ;;  %2825 = vmatpush3.msra.mxu1 %v1069_v16 }
 0x255   :  { %v654_v36 = vrot.slane %v653_v31, 1  ;;  %v661_v58 = vmax.f32 %v641_v34, 1e-20  ;;  %2826 = vmatprep.subr.mxu1 %v3127_v0 }
 0x256   :  { %v647_v51 = vrot.slane %v646_v32, 1  ;;  %v660_v53 = vmax.f32 %v634_v37, 1e-20  ;;  %2827 = vmatpush3.msra.mxu1 %v1068_v7 }
 0x257   :  { %v655_v62 = vadd.f32 %v654_v36, %v653_v31 }
 0x258   :  { %v648_v55 = vadd.f32 %v647_v51, %v646_v32  ;;  %v876_v59 = vsel %vm875_vm2, %v660_v53, %v874_v56 }
 0x259   :  { %v663_v6 = vmax.f32 %v655_v62, 1e-20  ;;  %v878_v63 = vsel %vm877_vm4, %v661_v58, %v876_v59 }
 0x25a   :  { %v662_v61 = vmax.f32 %v648_v55, 1e-20 }
 0x25c   :  { %v880_v2 = vsel %vm879_vm5, %v662_v61, %v878_v63 }
 0x25d   :  { %v882_v3 = vsel %vm881_vm6, %v663_v6, %v880_v2 }
 0x25e   :  { %2818 = vmatmul.mubr.msk.f32.vlgmr.msra.gmra.mxu0 %vm511_vm12, %v882_v3 }
 0x301   :  { %v2805_v9 = vpop.f32.mrf.mxu0 }
 0x302   :  { %v798_v17 = vmul.f32 %v2805_v9, %v3176_v14 }
 0x303   :  { %v758_v25 = vpop.f32.mrf.mxu0 }
 0x304   :  { %v797_v15 = vmul.f32 %v758_v25, %v3176_v14  ;;  %v812_v23 = vsel %vm285_vm3, %v798_v17, 0.0 }
 0x305   :  { %v2808_v10 = vpop.f32.mrf.mxu0  ;;  %v813_v57 = vrot.slane %v812_v23, 4 }
 0x306   :  { %v800_v19 = vmul.f32 %v2808_v10, %v3176_v14  ;;  %v805_v22 = vsel %vm285_vm3, %v797_v15, 0.0 }
 0x307   :  { %v768_v12 = vpop.f32.mrf.mxu0  ;;  %v806_v30 = vrot.slane %v805_v22, 4  ;;  %v814_v62 = vadd.f32 %v813_v57, %v812_v23 }
 0x308   :  { %v799_v20 = vmul.f32 %v768_v12, %v3176_v14  ;;  %v826_v26 = vsel %vm285_vm3, %v800_v19, 0.0 }
 0x309   :  { %v827_v33 = vrot.slane %v826_v26, 4  ;;  %v807_v49 = vadd.f32 %v806_v30, %v805_v22  ;;  %v815_v7 = vrot.slane %v814_v62, 2 }
 0x30a   :  { %v2811_v13 = vpop.f32.mrf.mxu0  ;;  %v819_v28 = vsel %vm285_vm3, %v799_v20, 0.0 }
 0x30b   :  { %v802_v24 = vmul.f32 %v2811_v13, %v3176_v14  ;;  %v820_v37 = vrot.slane %v819_v28, 4  ;;  %v828_v56 = vadd.f32 %v827_v33, %v826_v26  ;;  %v808_v3 = vrot.slane %v807_v49, 2 }
 0x30c   :  { %v778_v35 = vpop.f32.mrf.mxu0  ;;  %v816_v20 = vadd.f32 %v815_v7, %v814_v62 }
 0x30d   :  { %v801_v52 = vmul.f32 %v778_v35, %v3176_v14  ;;  %v840_v34 = vsel %vm285_vm3, %v802_v24, 0.0  ;;  %v821_v58 = vadd.f32 %v820_v37, %v819_v28  ;;  %v829_v35 = vrot.slane %v828_v56, 2 }
 0x30e   :  { %v2814_v60 = vpop.f32.mrf.mxu0  ;;  %v841_v55 = vrot.slane %v840_v34, 4  ;;  %v809_v17 = vadd.f32 %v808_v3, %v807_v49 }
 0x30f   :  { %v804_v31 = vmul.f32 %v2814_v60, %v3176_v14  ;;  %v833_v32 = vsel %vm285_vm3, %v801_v52, 0.0  ;;  %v822_v10 = vrot.slane %v821_v58, 2  ;;  %v830_v23 = vadd.f32 %v829_v35, %v828_v56 }
 0x310   :  { %v788_v21 = vpop.f32.mrf.mxu0  ;;  %v834_v51 = vrot.slane %v833_v32, 4  ;;  %v842_v9 = vadd.f32 %v841_v55, %v840_v34  ;;  %v810_v26 = vrot.slane %v809_v17, 1 }
 0x311   :  { %v803_v29 = vmul.f32 %v788_v21, %v3176_v14  ;;  %v854_v53 = vsel %vm285_vm3, %v804_v31, 0.0  ;;  %v823_v22 = vadd.f32 %v822_v10, %v821_v58 }
 0x312   :  { %v855_v14 = vrot.slane %v854_v53, 4  ;;  %v835_v4 = vadd.f32 %v834_v51, %v833_v32  ;;  %v843_v21 = vrot.slane %v842_v9, 2  ;;  %v831_v32 = vrot.slane %v830_v23, 1 }
 0x313   :  { %v847_v36 = vsel %vm285_vm3, %v803_v29, 0.0  ;;  %v817_v29 = vrot.slane %v816_v20, 1  ;;  %v824_v31 = vrot.slane %v823_v22, 1  ;;  %v811_v37 = vadd.f32 %v810_v26, %v809_v17 }
 0x314   :  { %v848_v59 = vrot.slane %v847_v36, 4  ;;  %v856_v60 = vadd.f32 %v855_v14, %v854_v53  ;;  %v836_v19 = vrot.slane %v835_v4, 2  ;;  %v844_v30 = vadd.f32 %v843_v21, %v842_v9  ;;  %v2640_v53 = vld [vmem:[#allocation2] ss:$0 sm:$0xff] }
 0x315   :  { %v818_v49 = vadd.f32 %v817_v29, %v816_v20  ;;  %v825_v55 = vadd.f32 %v824_v31, %v823_v22 }
 0x316   :  { %v849_v12 = vadd.f32 %v848_v59, %v847_v36  ;;  %v857_v24 = vrot.slane %v856_v60, 2  ;;  %v837_v28 = vadd.f32 %v836_v19, %v835_v4  ;;  %v845_v51 = vrot.slane %v844_v30, 1 }
 0x318   :  { %v850_v52 = vrot.slane %v849_v12, 2  ;;  %v858_v33 = vadd.f32 %v857_v24, %v856_v60  ;;  %v838_v34 = vrot.slane %v837_v28, 1  ;;  %v846_v7 = vadd.f32 %v845_v51, %v844_v30 }
 0x31a   :  { %v851_v57 = vadd.f32 %v850_v52, %v849_v12  ;;  %v859_v14 = vrot.slane %v858_v33, 1  ;;  %v839_v3 = vadd.f32 %v838_v34, %v837_v28 }
 0x31c   :  { %v852_v58 = vrot.slane %v851_v57, 1  ;;  %v860_v17 = vadd.f32 %v859_v14, %v858_v33 }
 0x31e   :  { %v951_v61 = vpop.f32.mrf.mxu0  ;;  %v853_v12 = vadd.f32 %v852_v58, %v851_v57 }
 0x31f   :  { %v956_v6 = vrot.slane %v951_v61, 1  ;;  %v957_v63 = vrot.slane %v951_v61, 2  ;;  %v958_v2 = vrot.slane %v951_v61, 3  ;;  %v959_v5 = vrot.slane %v951_v61, 4 }
 0x320   :  { %2952 = vrcp.f32 %v951_v61  ;;  %v2819_v16 = vpop.f32.mrf.mxu0  ;;  %v960_v25 = vrot.slane %v951_v61, 5  ;;  %v961_v13 = vrot.slane %v951_v61, 6  ;;  %v962_v15 = vrot.slane %v951_v61, 7 }
 0x321   :  { %2954 = vrcp.f32 %v956_v6  ;;  %v832_v61 = vadd.f32 %v831_v32, %v830_v23  ;;  %v2641_v6 = vld [vmem:[#allocation2 + $0x48] ss:$0 sm:$0xff] }
 0x322   :  { %2956 = vrcp.f32 %v957_v63 }
 0x323   :  { %2958 = vrcp.f32 %v958_v2 }
 0x324   :  { %2960 = vrcp.f32 %v959_v5 }
 0x325   :  { %2962 = vrcp.f32 %v960_v25 }
 0x326   :  { %2964 = vrcp.f32 %v961_v13 }
 0x327   :  { %2966 = vrcp.f32 %v962_v15 }
 0x32d   :  { %v2953_v36 = vpop.eup %2952 }
 0x32e   :  { %v2955_v62 = vpop.eup %2954  ;;  %v972_v56 = vmul.f32 %v2953_v36, %v811_v37 }
 0x32f   :  { %v2957_v59 = vpop.eup %2956  ;;  %v974_v63 = vmul.f32 %v2955_v62, %v818_v49 }
 0x330   :  { %v2959_v2 = vpop.eup %2958  ;;  %v976_v4 = vmul.f32 %v2957_v59, %v825_v55  ;;  %v992_v5 = vmul.f32 %v2640_v53, %v972_v56 }
 0x331   :  { %v2961_v16 = vpop.eup %2960  ;;  %v978_v9 = vmul.f32 %v2959_v2, %v832_v61  ;;  %v993_v25 = vmul.f32 %v2640_v53, %v974_v63 }
 0x332   :  { %v2963_v10 = vpop.eup %2962  ;;  %v980_v13 = vmul.f32 %v2961_v16, %v839_v3  ;;  %v994_v35 = vmul.f32 %v2640_v53, %v976_v4  ;;  %v3386_v60 = vadd.f32 %v2641_v6, %v992_v5 }
 0x333   :  { %v2965_v15 = vpop.eup %2964  ;;  %v982_v19 = vmul.f32 %v2963_v10, %v846_v7  ;;  %v995_v20 = vmul.f32 %v2640_v53, %v978_v9  ;;  %v1005_v21 = vadd.f32 %v2641_v6, %v993_v25 }
 0x334   :  { %v2967_v22 = vpop.eup %2966  ;;  %v984_v52 = vmul.f32 %v2965_v15, %v853_v12  ;;  %v996_v23 = vmul.f32 %v2640_v53, %v980_v13  ;;  %v1006_v24 = vadd.f32 %v2641_v6, %v994_v35  ;;  %v2642_v26 = vmul.f32 -1.442695, %v3386_v60 }
 0x335   :  { %v986_v28 = vmul.f32 %v2967_v22, %v860_v17  ;;  %v997_v29 = vmul.f32 %v2640_v53, %v982_v19  ;;  %v1007_v30 = vadd.f32 %v2641_v6, %v995_v20  ;;  %v2643_v31 = vmul.f32 -1.442695, %v1005_v21 }
 0x336   :  { %v998_v57 = vmul.f32 %v2640_v53, %v984_v52  ;;  %v1008_v32 = vadd.f32 %v2641_v6, %v996_v23  ;;  %2968 = vpow2.f32 %v2642_v26  ;;  %v2644_v37 = vmul.f32 -1.442695, %v1006_v24 }
 0x337   :  { %v999_v34 = vmul.f32 %v2640_v53, %v986_v28  ;;  %v1009_v36 = vadd.f32 %v2641_v6, %v997_v29  ;;  %2970 = vpow2.f32 %v2643_v31  ;;  %v2645_v33 = vmul.f32 -1.442695, %v1007_v30 }
 0x338   :  { %v1010_v49 = vadd.f32 %v2641_v6, %v998_v57  ;;  %2972 = vpow2.f32 %v2644_v37  ;;  %v2646_v51 = vmul.f32 -1.442695, %v1008_v32 }
 0x339   :  { %v1011_v62 = vadd.f32 %v2641_v6, %v999_v34  ;;  %2974 = vpow2.f32 %v2645_v33  ;;  %v2647_v55 = vmul.f32 -1.442695, %v1009_v36 }
 0x33a   :  { %2976 = vpow2.f32 %v2646_v51  ;;  %v2648_v58 = vmul.f32 -1.442695, %v1010_v49 }
 0x33b   :  { %2978 = vpow2.f32 %v2647_v55  ;;  %v2649_v56 = vmul.f32 -1.442695, %v1011_v62 }
 0x33c   :  { %2980 = vpow2.f32 %v2648_v58 }
 0x33d   :  { %2982 = vpow2.f32 %v2649_v56 }
 0x343   :  { %v2969_v59 = vpop.eup %2968 }
 0x344   :  { %v2971_v61 = vpop.eup %2970  ;;  %v1036_v14 = vadd.f32 1.0, %v2969_v59 }
 0x345   :  { %v2973_v63 = vpop.eup %2972  ;;  %v1037_v53 = vadd.f32 1.0, %v2971_v61 }
 0x346   :  { %v2975_v2 = vpop.eup %2974  ;;  %v1038_v3 = vadd.f32 1.0, %v2973_v63  ;;  %2984 = vrcp.f32 %v1036_v14  ;;  %v2650_v63 = vld [vmem:[#allocation2 + $0x70] ss:$0 sm:$0xff] }
 0x347   :  { %v2977_v4 = vpop.eup %2976  ;;  %v1039_v5 = vadd.f32 1.0, %v2975_v2  ;;  %2986 = vrcp.f32 %v1037_v53 }
 0x348   :  { %v2979_v6 = vpop.eup %2978  ;;  %v1040_v16 = vadd.f32 1.0, %v2977_v4  ;;  %2988 = vrcp.f32 %v1038_v3  ;;  %v1074_v4 = vld [vmem:[#allocation2 + $0x80] sm:$0xff] }
 0x349   :  { %v2981_v7 = vpop.eup %2980  ;;  %v1041_v9 = vadd.f32 1.0, %v2979_v6  ;;  %2990 = vrcp.f32 %v1039_v5  ;;  %v1073_v5 = vld [vmem:[#allocation2 + $0x78] sm:$0xff] }
 0x34a   :  { %v2983_v25 = vpop.eup %2982  ;;  %v1042_v10 = vadd.f32 1.0, %v2981_v7  ;;  %2992 = vrcp.f32 %v1040_v16 }
 0x34b   :  { %v1043_v12 = vadd.f32 1.0, %v2983_v25  ;;  %2994 = vrcp.f32 %v1041_v9 }
 0x34c   :  { %2996 = vrcp.f32 %v1042_v10 }
 0x34d   :  { %2998 = vrcp.f32 %v1043_v12 }
 0x353   :  { %v2985_v13 = vpop.eup %2984 }
 0x354   :  { %v2987_v35 = vpop.eup %2986  ;;  %v1060_v52 = vmul.f32 %v2985_v13, %v3386_v60 }
 0x355   :  { %v2989_v15 = vpop.eup %2988  ;;  %v1061_v17 = vmul.f32 %v2987_v35, %v1005_v21 }
 0x356   :  { %v2991_v19 = vpop.eup %2990  ;;  %v1062_v20 = vmul.f32 %v2989_v15, %v1006_v24 }
 0x357   :  { %v2993_v22 = vpop.eup %2992  ;;  %v1063_v23 = vmul.f32 %v2991_v19, %v1007_v30  ;;  %v1091_v26 = vrot.slane %v1061_v17, 7 }
 0x358   :  { %v2995_v28 = vpop.eup %2994  ;;  %v1064_v29 = vmul.f32 %v2993_v22, %v1008_v32  ;;  %v1093_v31 = vrot.slane %v1062_v20, 6 }
 0x359   :  { %v2997_v57 = vpop.eup %2996  ;;  %v1065_v37 = vmul.f32 %v2995_v28, %v1009_v36  ;;  %v1092_v34 = vsel %vm869_vm13, %v1091_v26, %v1060_v52  ;;  %v1095_v33 = vrot.slane %v1063_v23, 5 }
 0x35a   :  { %v2999_v51 = vpop.eup %2998  ;;  %v1066_v55 = vmul.f32 %v2997_v57, %v1010_v49  ;;  %v1094_v58 = vsel %vm871_vm14, %v1093_v31, %v1092_v34  ;;  %v1097_v21 = vrot.slane %v1064_v29, 4  ;;  %v1076_v49 = vld [vmem:[#allocation2 + $0x90] sm:$0xff] }
 0x35b   :  { %v1067_v56 = vmul.f32 %v2999_v51, %v1011_v62  ;;  %v1096_v24 = vsel %vm873_vm15, %v1095_v33, %v1094_v58  ;;  %v1099_v59 = vrot.slane %v1065_v37, 3  ;;  %2831 = vmatprep.subr.mxu0 %v1076_v49  ;;  %v1075_v62 = vld [vmem:[#allocation2 + $0x88] sm:$0xff] }
 0x35c   :  { %v1098_v60 = vsel %vm875_vm2, %v1097_v21, %v1096_v24  ;;  %v1101_v30 = vrot.slane %v1066_v55, 2  ;;  %2832 = vmatpush3.msra.mxu0 %v1076_v49 }
 0x35d   :  { %v1100_v32 = vsel %vm877_vm4, %v1099_v59, %v1098_v60  ;;  %v1103_v61 = vrot.slane %v1067_v56, 1  ;;  %2833 = vmatprep.subr.mxu0 %v1075_v62 }
 0x35e   :  { %v1102_v36 = vsel %vm879_vm5, %v1101_v30, %v1100_v32  ;;  %2834 = vmatpush3.msra.mxu0 %v1075_v62 }
 0x35f   :  { %v1104_v14 = vsel %vm881_vm6, %v1103_v61, %v1102_v36  ;;  %2835 = vmatprep.subr.mxu0 %v1074_v4 }
 0x360   :  { %2829 = vmatmul.mubr.msk.f32.vlgmr.msra.gmra.mxu1 %vm285_vm3, %v1104_v14  ;;  %2836 = vmatpush3.msra.mxu0 %v1074_v4 }
 0x361   :  { %2837 = vmatprep.subr.mxu0 %v1073_v5 }
 0x362   :  { %2838 = vmatpush3.msra.mxu0 %v1073_v5 }
 0x363   :  { %2870 = vmatprep.subr.mxu0 %v3127_v0 }
 0x420   :  { %v1173_v53 = vpop.f32.mrf.mxu1 }
 0x421   :  { %v3398_v2 = vadd.f32 %v2650_v63, %v1173_v53 }
 0x422   :  { %v2830_v3 = vpop.f32.mrf.mxu1 }
 0x423   :  { %v1185_v6 = vrot.slane %v3398_v2, %v3174_v11  ;;  %v1178_v16 = vcombine.high %v3398_v2, %v3398_v2 }
 0x425   :  { %v1201_v7 = vrot.slane %v1185_v6, %v3174_v11  ;;  %v1193_v9 = vcombine.high %v1185_v6, %v1185_v6  ;;  %v1192_v25 = vrot.slane %v1178_v16, %v3174_v11 }
 0x427   :  { %v1230_v10 = vrot.slane %v1201_v7, %v3180_v18  ;;  %v1215_v12 = vrot.slane %v1193_v9, %v3174_v11  ;;  %v1223_v13 = vcombine.high %v1201_v7, %v1201_v7  ;;  %v1194_v17 = vcombine.high %v1192_v25, %v1192_v25 }
 0x428   :  { %v1208_v20 = vrot.slane %v1192_v25, %v3174_v11 }
 0x429   :  { %1259 = vrot.lane.b32.xlu1 %v1230_v10, %s3130_s0  ;;  %v1234_v35 = vrot.slane %v1215_v12, %v3180_v18  ;;  %v1225_v15 = vcombine.high %v1215_v12, %v1215_v12  ;;  %v1238_v19 = vrot.slane %v1223_v13, %v3180_v18  ;;  %v1222_v52 = vrot.slane %v1194_v17, %v3174_v11  ;;  %v3444_v13 = vld [vmem:[#allocation2 + $0x98] sm:$0x3] }
 0x42a   :  { %v1246_v23 = vrot.slane %v1208_v20, %v3180_v18  ;;  %v1224_v26 = vcombine.high %v1208_v20, %v1208_v20  ;;  %2851 = vmatprep.subr.msk.mxu1 %vm688_vm11, %v3444_v13 }
 0x42b   :  { %1261 = vrot.lane.b32.xlu0 %v1234_v35, %s3130_s0  ;;  %v1242_v22 = vrot.slane %v1225_v15, %v3180_v18  ;;  %v1250_v28 = vrot.slane %v1222_v52, %v3180_v18  ;;  %v1226_v29 = vcombine.high %v1222_v52, %v1222_v52  ;;  %2852 = vmatpush3.msk.msra.mxu1 %vm688_vm11, %v3444_v13 }
 0x42c   :  { %v1254_v31 = vrot.slane %v1224_v26, %v3180_v18  ;;  %2865 = vmatprep.subr.mxu1 %v3127_v0 }
 0x42d   :  { %1263 = vrot.lane.b32.xlu1 %v1238_v19, %s3130_s0  ;;  %v1258_v57 = vrot.slane %v1226_v29, %v3180_v18 }
 0x42f   :  { %1265 = vrot.lane.b32.xlu0 %v1242_v22, %s3130_s0 }
 0x431   :  { %1267 = vrot.lane.b32.xlu1 %v1246_v23, %s3130_s0 }
 0x433   :  { %1269 = vrot.lane.b32.xlu0 %v1250_v28, %s3130_s0 }
 0x435   :  { %1271 = vrot.lane.b32.xlu1 %v1254_v31, %s3130_s0 }
 0x437   :  { %1273 = vrot.lane.b32.xlu0 %v1258_v57, %s3130_s0 }
 0x49b   :  { %v1260_v11 = vpop.permute.xlu1 %1259 }
 0x49c   :  { %v1283_v37 = vadd.f32 %v1260_v11, %v3398_v2 }
 0x49d   :  { %v1262_v34 = vpop.permute.xlu0 %1261 }
 0x49e   :  { %vm1291_vm7 = vcmp.gt.f32.partialorder %v1283_v37, 0.0  ;;  %v1299_v33 = vmul.f32 0.2, %v1283_v37  ;;  %v1284_v51 = vadd.f32 %v1262_v34, %v3398_v2 }
 0x49f   :  { %v1264_v55 = vpop.permute.xlu1 %1263 }
 0x4a0   :  { %vm1292_vm8 = vcmp.gt.f32.partialorder %v1284_v51, 0.0  ;;  %v1300_v58 = vmul.f32 0.2, %v1284_v51  ;;  %v1285_v21 = vadd.f32 %v1264_v55, %v3398_v2  ;;  %v1307_v56 = vsel %vm1291_vm7, %v1283_v37, %v1299_v33 }
 0x4a1   :  { %2839 = vmatprep.mubr.msk.f32.mxu0 %vm285_vm3, %v1307_v56  ;;  %v1266_v24 = vpop.permute.xlu0 %1265 }
 0x4a2   :  { %v1308_v18 = vsel %vm1292_vm8, %v1284_v51, %v1300_v58  ;;  %vm1293_vm9 = vcmp.gt.f32.partialorder %v1285_v21, 0.0  ;;  %v1301_v59 = vmul.f32 0.2, %v1285_v21  ;;  %v1286_v60 = vadd.f32 %v1266_v24, %v3398_v2 }
 0x4a3   :  { %2840 = vmatmul.mubr.msk.f32.vlgmr.msra.gmra.mxu0 %vm285_vm3, %v1308_v18  ;;  %v1268_v30 = vpop.permute.xlu1 %1267 }
 0x4a4   :  { %vm1294_vm10 = vcmp.gt.f32.partialorder %v1286_v60, 0.0  ;;  %v1302_v32 = vmul.f32 0.2, %v1286_v60  ;;  %v1287_v61 = vadd.f32 %v1268_v30, %v3398_v2  ;;  %v1309_v36 = vsel %vm1293_vm9, %v1285_v21, %v1301_v59 }
 0x4a5   :  { %2842 = vmatprep.mubr.msk.f32.mxu0 %vm285_vm3, %v1309_v36  ;;  %v1270_v14 = vpop.permute.xlu0 %1269 }
 0x4a6   :  { %vm1295_vm7 = vcmp.gt.f32.partialorder %v1287_v61, 0.0  ;;  %v1303_v49 = vmul.f32 0.2, %v1287_v61  ;;  %v1288_v63 = vadd.f32 %v1270_v14, %v3398_v2  ;;  %v1310_v62 = vsel %vm1294_vm10, %v1286_v60, %v1302_v32 }
 0x4a7   :  { %2843 = vmatmul.mubr.msk.f32.gmra.mxu0 %vm285_vm3, %v1310_v62  ;;  %v1272_v53 = vpop.permute.xlu1 %1271 }
 0x4a8   :  { %vm1296_vm8 = vcmp.gt.f32.partialorder %v1288_v63, 0.0  ;;  %v1304_v3 = vmul.f32 0.2, %v1288_v63  ;;  %v1289_v4 = vadd.f32 %v1272_v53, %v3398_v2  ;;  %v1311_v5 = vsel %vm1295_vm7, %v1287_v61, %v1303_v49 }
 0x4a9   :  { %2845 = vmatprep.mubr.msk.f32.mxu0 %vm285_vm3, %v1311_v5  ;;  %v1274_v6 = vpop.permute.xlu0 %1273 }
 0x4aa   :  { %vm1297_vm9 = vcmp.gt.f32.partialorder %v1289_v4, 0.0  ;;  %v1305_v16 = vmul.f32 0.2, %v1289_v4  ;;  %v1290_v7 = vadd.f32 %v1274_v6, %v3398_v2  ;;  %v1312_v9 = vsel %vm1296_vm8, %v1288_v63, %v1304_v3 }
 0x4ab   :  { %2846 = vmatmul.mubr.msk.f32.gmra.mxu0 %vm285_vm3, %v1312_v9 }
 0x4ac   :  { %vm1298_vm1 = vcmp.gt.f32.partialorder %v1290_v7, 0.0  ;;  %v1306_v25 = vmul.f32 0.2, %v1290_v7  ;;  %v1313_v10 = vsel %vm1297_vm9, %v1289_v4, %v1305_v16 }
 0x4ad   :  { %2848 = vmatprep.mubr.msk.f32.mxu0 %vm285_vm3, %v1313_v10 }
 0x4ae   :  { %v1314_v12 = vsel %vm1298_vm1, %v1290_v7, %v1306_v25  ;;  %vm3615_vm1 = vcmask 130048  }
 0x4af   :  { %2849 = vmatmul.mubr.msk.f32.gmra.mxu0 %vm285_vm3, %v1314_v12 }
 0x4b0   :  { %2872 = vmatprep.mubr.msk.f32.mxu0 %vm3128_vm0, %v3127_v0 }
 0x563   :  { %v2841_v35 = vpop.f32.mrf.mxu0 }
 0x564   :  { %v1445_v15 = vmul.f32 %v2841_v35, %v3257_v39 }
 0x565   :  { %v1405_v17 = vpop.f32.mrf.mxu0 }
 0x566   :  { %v1453_v19 = vadd.f32 %v1445_v15, %v3263_v42  ;;  %v1444_v20 = vmul.f32 %v1405_v17, %v3255_v38 }
 0x567   :  { %v2844_v22 = vpop.f32.mrf.mxu0 }
 0x568   :  { %v1467_v52 = vsel %vm511_vm12, %v1453_v19, -inf  ;;  %v1452_v23 = vadd.f32 %v1444_v20, %v3265_v43  ;;  %v1447_v26 = vmul.f32 %v2844_v22, %v3259_v40 }
 0x569   :  { %v1468_v28 = vrot.slane %v1467_v52, 4  ;;  %v1415_v29 = vpop.f32.mrf.mxu0 }
 0x56a   :  { %v1460_v31 = vsel %vm511_vm12, %v1452_v23, -inf  ;;  %v3459_v57 = vadd.f32 %v1447_v26, %v3271_v46  ;;  %v1446_v11 = vmul.f32 %v1415_v29, %v3261_v41 }
 0x56b   :  { %v1469_v37 = vmax.f32 %v1467_v52, %v1468_v28  ;;  %v1461_v42 = vrot.slane %v1460_v31, 4  ;;  %v2847_v34 = vpop.f32.mrf.mxu0 }
 0x56c   :  { %v1481_v33 = vsel %vm511_vm12, %v3459_v57, -inf  ;;  %v3465_v51 = vadd.f32 %v1446_v11, %v3267_v44  ;;  %v1449_v43 = vmul.f32 %v2847_v34, %v3273_v47 }
 0x56d   :  { %v1470_v55 = vrot.slane %v1469_v37, 2  ;;  %v1462_v58 = vmax.f32 %v1460_v31, %v1461_v42  ;;  %v1482_v21 = vrot.slane %v1481_v33, 4  ;;  %v1425_v56 = vpop.f32.mrf.mxu0 }
 0x56e   :  { %v1474_v46 = vsel %vm511_vm12, %v3465_v51, -inf  ;;  %v3471_v24 = vadd.f32 %v1449_v43, %v3293_v1  ;;  %v1448_v18 = vmul.f32 %v1425_v56, %v3269_v45 }
 0x56f   :  { %v1471_v59 = vmax.f32 %v1469_v37, %v1470_v55  ;;  %v1463_v60 = vrot.slane %v1462_v58, 2  ;;  %v1483_v30 = vmax.f32 %v1481_v33, %v1482_v21  ;;  %v1475_v32 = vrot.slane %v1474_v46, 4  ;;  %v2850_v44 = vpop.f32.mrf.mxu0 }
 0x570   :  { %v1495_v61 = vsel %vm511_vm12, %v3471_v24, -inf  ;;  %v1456_v36 = vadd.f32 %v1448_v18, %v3276_v50  ;;  %v1451_v14 = vmul.f32 %v2850_v44, %v3301_v8 }
 0x571   :  { %v1472_v49 = vrot.slane %v1471_v59, 1  ;;  %v1464_v63 = vmax.f32 %v1462_v58, %v1463_v60  ;;  %v1484_v62 = vrot.slane %v1483_v30, 2  ;;  %v1476_v53 = vmax.f32 %v1474_v46, %v1475_v32  ;;  %v1435_v1 = vpop.f32.mrf.mxu0 }
 0x572   :  { %v1496_v3 = vrot.slane %v1495_v61, 4  ;;  %v1488_v4 = vsel %vm511_vm12, %v1456_v36, -inf  ;;  %v1459_v5 = vadd.f32 %v1451_v14, %v3315_v27  ;;  %v1450_v6 = vmul.f32 %v1435_v1, %v3280_v54 }
 0x573   :  { %v1473_v16 = vmax.f32 %v1471_v59, %v1472_v49  ;;  %v1465_v7 = vrot.slane %v1464_v63, 1  ;;  %v1485_v9 = vmax.f32 %v1483_v30, %v1484_v62  ;;  %v1477_v25 = vrot.slane %v1476_v53, 2 }
 0x574   :  { %v1497_v10 = vmax.f32 %v1495_v61, %v1496_v3  ;;  %v1489_v50 = vrot.slane %v1488_v4, 4  ;;  %v1509_v12 = vsel %vm511_vm12, %v1459_v5, -inf  ;;  %v1458_v35 = vadd.f32 %v1450_v6, %v3321_v48 }
 0x575   :  { %v1517_v15 = vsub.f32 %v1453_v19, %v1473_v16  ;;  %v1466_v17 = vmax.f32 %v1464_v63, %v1465_v7  ;;  %v1486_v20 = vrot.slane %v1485_v9, 1  ;;  %v1478_v22 = vmax.f32 %v1476_v53, %v1477_v25 }
 0x576   :  { %v1498_v52 = vrot.slane %v1497_v10, 2  ;;  %v1490_v26 = vmax.f32 %v1488_v4, %v1489_v50  ;;  %v1510_v28 = vrot.slane %v1509_v12, 4  ;;  %v1502_v27 = vsel %vm511_vm12, %v1458_v35, -inf }
 0x577   :  { %v1526_v29 = vmul.f32 1.442695, %v1517_v15  ;;  %v1516_v31 = vsub.f32 %v1452_v23, %v1466_v17  ;;  %v1487_v11 = vmax.f32 %v1485_v9, %v1486_v20  ;;  %v1479_v37 = vrot.slane %v1478_v22, 1 }
 0x578   :  { %v1499_v42 = vmax.f32 %v1497_v10, %v1498_v52  ;;  %v1491_v34 = vrot.slane %v1490_v26, 2  ;;  %v1511_v33 = vmax.f32 %v1509_v12, %v1510_v28  ;;  %v1503_v43 = vrot.slane %v1502_v27, 4 }
 0x579   :  { %3000 = vpow2.f32 %v1526_v29  ;;  %v1524_v55 = vmul.f32 1.442695, %v1516_v31  ;;  %v1519_v48 = vsub.f32 %v3459_v57, %v1487_v11  ;;  %v1480_v19 = vmax.f32 %v1478_v22, %v1479_v37 }
 0x57a   :  { %v1500_v58 = vrot.slane %v1499_v42, 1  ;;  %v1492_v21 = vmax.f32 %v1490_v26, %v1491_v34  ;;  %v1512_v56 = vrot.slane %v1511_v33, 2  ;;  %v1504_v46 = vmax.f32 %v1502_v27, %v1503_v43 }
 0x57b   :  { %3002 = vpow2.f32 %v1524_v55  ;;  %v1530_v18 = vmul.f32 1.442695, %v1519_v48  ;;  %v1518_v59 = vsub.f32 %v3465_v51, %v1480_v19 }
 0x57c   :  { %v1501_v23 = vmax.f32 %v1499_v42, %v1500_v58  ;;  %v1493_v60 = vrot.slane %v1492_v21, 1  ;;  %v1513_v30 = vmax.f32 %v1511_v33, %v1512_v56  ;;  %v1505_v32 = vrot.slane %v1504_v46, 2 }
 0x57d   :  { %3004 = vpow2.f32 %v1530_v18  ;;  %v1528_v44 = vmul.f32 1.442695, %v1518_v59 }
 0x57e   :  { %v1521_v61 = vsub.f32 %v3471_v24, %v1501_v23  ;;  %v1494_v14 = vmax.f32 %v1492_v21, %v1493_v60  ;;  %v1514_v49 = vrot.slane %v1513_v30, 1  ;;  %v1506_v57 = vmax.f32 %v1504_v46, %v1505_v32 }
 0x57f   :  { %3006 = vpow2.f32 %v1528_v44 }
 0x580   :  { %v1534_v63 = vmul.f32 1.442695, %v1521_v61  ;;  %v1520_v62 = vsub.f32 %v1456_v36, %v1494_v14  ;;  %v1515_v53 = vmax.f32 %v1513_v30, %v1514_v49  ;;  %v1507_v1 = vrot.slane %v1506_v57, 1 }
 0x582   :  { %3008 = vpow2.f32 %v1534_v63  ;;  %v1532_v3 = vmul.f32 1.442695, %v1520_v62  ;;  %v1523_v4 = vsub.f32 %v1459_v5, %v1515_v53  ;;  %v1508_v51 = vmax.f32 %v1506_v57, %v1507_v1 }
 0x584   :  { %3010 = vpow2.f32 %v1532_v3  ;;  %v1538_v6 = vmul.f32 1.442695, %v1523_v4  ;;  %v1522_v16 = vsub.f32 %v1458_v35, %v1508_v51 }
 0x586   :  { %v3001_v7 = vpop.eup %3000  ;;  %3012 = vpow2.f32 %v1538_v6  ;;  %v1536_v9 = vmul.f32 1.442695, %v1522_v16 }
 0x587   :  { %v1541_v24 = vmul.f32 %v3001_v7, %v3257_v39 }
 0x588   :  { %v3003_v25 = vpop.eup %3002  ;;  %3014 = vpow2.f32 %v1536_v9 }
 0x589   :  { %v1540_v10 = vmul.f32 %v3003_v25, %v3255_v38  ;;  %v1555_v36 = vsel %vm511_vm12, %v1541_v24, 0.0 }
 0x58a   :  { %v3005_v50 = vpop.eup %3004  ;;  %v1556_v12 = vrot.slane %v1555_v36, 4 }
 0x58b   :  { %v1548_v15 = vsel %vm511_vm12, %v1540_v10, 0.0  ;;  %2853 = vmatprep.mubr.msk.f32.mxu1 %vm511_vm12, %v1540_v10  ;;  %v1543_v5 = vmul.f32 %v3005_v50, %v3259_v40 }
 0x58c   :  { %v3007_v35 = vpop.eup %3006  ;;  %v1549_v17 = vrot.slane %v1548_v15, 4  ;;  %v1557_v20 = vadd.f32 %v1556_v12, %v1555_v36  ;;  %2854 = vmatmul.mubr.msk.f32.vlgmr.msra.gmra.mxu1 %vm511_vm12, %v1541_v24 }
 0x58d   :  { %v1542_v39 = vmul.f32 %v3007_v35, %v3261_v41  ;;  %v1569_v22 = vsel %vm511_vm12, %v1543_v5, 0.0  ;;  %2866 = vmatpush3.msk.msra.mxu1 %vm688_vm11, %v3444_v13  ;;  %vm2019_vm11 = vcmask 64512  }
 0x58e   :  { %v1550_v38 = vadd.f32 %v1549_v17, %v1548_v15  ;;  %v1558_v52 = vrot.slane %v1557_v20, 2  ;;  %v1570_v26 = vrot.slane %v1569_v22, 4  ;;  %2875 = vmatprep.subr.mxu1 %v3127_v0 }
 0x58f   :  { %v3009_v28 = vpop.eup %3008  ;;  %v1562_v40 = vsel %vm511_vm12, %v1542_v39, 0.0  ;;  %2856 = vmatprep.mubr.msk.f32.mxu1 %vm511_vm12, %v1542_v39 }
 0x590   :  { %v1551_v27 = vrot.slane %v1550_v38, 2  ;;  %v1563_v29 = vrot.slane %v1562_v40, 4  ;;  %v1571_v31 = vadd.f32 %v1570_v26, %v1569_v22  ;;  %2857 = vmatmul.mubr.msk.f32.gmra.mxu1 %vm511_vm12, %v1543_v5  ;;  %v1545_v11 = vmul.f32 %v3009_v28, %v3273_v47 }
 0x591   :  { %v3011_v41 = vpop.eup %3010  ;;  %v1559_v13 = vadd.f32 %v1558_v52, %v1557_v20 }
 0x592   :  { %v1552_v37 = vadd.f32 %v1551_v27, %v1550_v38  ;;  %v1564_v42 = vadd.f32 %v1563_v29, %v1562_v40  ;;  %v1572_v34 = vrot.slane %v1571_v31, 2  ;;  %v1544_v43 = vmul.f32 %v3011_v41, %v3269_v45 }
 0x593   :  { %v3013_v33 = vpop.eup %3012  ;;  %v1583_v55 = vsel %vm511_vm12, %v1545_v11, 0.0  ;;  %v1560_v47 = vrot.slane %v1559_v13, 1 }
 0x594   :  { %v1553_v48 = vrot.slane %v1552_v37, 1  ;;  %v1565_v19 = vrot.slane %v1564_v42, 2  ;;  %v1576_v21 = vsel %vm511_vm12, %v1544_v43, 0.0  ;;  %2859 = vmatprep.mubr.msk.f32.mxu1 %vm511_vm12, %v1544_v43  ;;  %v1584_v56 = vrot.slane %v1583_v55, 4 }
 0x595   :  { %v3015_v58 = vpop.eup %3014  ;;  %v1547_v46 = vmul.f32 %v3013_v33, %v3301_v8  ;;  %v1573_v59 = vadd.f32 %v1572_v34, %v1571_v31  ;;  %2860 = vmatmul.mubr.msk.f32.gmra.mxu1 %vm511_vm12, %v1545_v11  ;;  %v1577_v23 = vrot.slane %v1576_v21, 4  ;;  %v1561_v8 = vadd.f32 %v1560_v47, %v1559_v13  ;;  %v2093_v34 = vld [vmem:[%s3611_s3] sm:$0x3] }
 0x596   :  { %v1566_v18 = vadd.f32 %v1565_v19, %v1564_v42  ;;  %v1585_v60 = vadd.f32 %v1584_v56, %v1583_v55  ;;  %v1546_v45 = vmul.f32 %v3015_v58, %v3280_v54  ;;  %v1554_v32 = vadd.f32 %v1553_v48, %v1552_v37  ;;  %v2095_v37 = vld [vmem:[#allocation2 + $0xb0] sm:$0xff]  ;;  %v2094_v42 = vld [vmem:[#allocation2 + $0xa8] sm:$0xff] }
 0x597   :  { %v1597_v30 = vsel %vm511_vm12, %v1547_v46, 0.0  ;;  %v1578_v14 = vadd.f32 %v1577_v23, %v1576_v21  ;;  %v1574_v62 = vrot.slane %v1573_v59, 1  ;;  %v1605_v24 = vmax.f32 %v1561_v8, 1e-20 }
 0x598   :  { %v1567_v44 = vrot.slane %v1566_v18, 1  ;;  %v1598_v61 = vrot.slane %v1597_v30, 4  ;;  %v1586_v49 = vrot.slane %v1585_v60, 2  ;;  %v1590_v57 = vsel %vm511_vm12, %v1546_v45, 0.0  ;;  %2862 = vmatprep.mubr.msk.f32.mxu1 %vm511_vm12, %v1546_v45 }
 0x599   :  { %v1591_v53 = vrot.slane %v1590_v57, 4  ;;  %2863 = vmatmul.mubr.msk.f32.gmra.mxu1 %vm511_vm12, %v1547_v46  ;;  %v1579_v1 = vrot.slane %v1578_v14, 2  ;;  %v1604_v4 = vmax.f32 %v1554_v32, 1e-20  ;;  %v1575_v25 = vadd.f32 %v1574_v62, %v1573_v59 }
 0x59a   :  { %v1568_v63 = vadd.f32 %v1567_v44, %v1566_v18  ;;  %v1587_v3 = vadd.f32 %v1586_v49, %v1585_v60  ;;  %v1599_v54 = vadd.f32 %v1598_v61, %v1597_v30  ;;  %2867 = vmatprep.mubr.msk.f32.mxu1 %vm3128_vm0, %v3127_v0 }
 0x59b   :  { %v1592_v51 = vadd.f32 %v1591_v53, %v1590_v57  ;;  %v1580_v16 = vadd.f32 %v1579_v1, %v1578_v14  ;;  %v1816_v12 = vsel %vm869_vm13, %v1605_v24, %v1604_v4  ;;  %v1607_v39 = vmax.f32 %v1575_v25, 1e-20 }
 0x59c   :  { %v1606_v6 = vmax.f32 %v1568_v63, 1e-20  ;;  %v1588_v7 = vrot.slane %v1587_v3, 1  ;;  %v1600_v9 = vrot.slane %v1599_v54, 2 }
 0x59d   :  { %v1593_v10 = vrot.slane %v1592_v51, 2  ;;  %v1581_v36 = vrot.slane %v1580_v16, 1 }
 0x59e   :  { %v1601_v50 = vadd.f32 %v1600_v9, %v1599_v54  ;;  %v1817_v5 = vsel %vm871_vm14, %v1606_v6, %v1816_v12  ;;  %v1589_v17 = vadd.f32 %v1588_v7, %v1587_v3 }
 0x59f   :  { %v1594_v15 = vadd.f32 %v1593_v10, %v1592_v51  ;;  %v1582_v35 = vadd.f32 %v1581_v36, %v1580_v16  ;;  %v1818_v28 = vsel %vm873_vm15, %v1607_v39, %v1817_v5 }
 0x5a0   :  { %v1602_v20 = vrot.slane %v1601_v50, 1  ;;  %v1609_v40 = vmax.f32 %v1589_v17, 1e-20 }
 0x5a1   :  { %v1595_v22 = vrot.slane %v1594_v15, 1  ;;  %v1608_v38 = vmax.f32 %v1582_v35, 1e-20 }
 0x5a2   :  { %v1603_v52 = vadd.f32 %v1602_v20, %v1601_v50 }
 0x5a3   :  { %v1596_v26 = vadd.f32 %v1595_v22, %v1594_v15  ;;  %v1819_v27 = vsel %vm875_vm2, %v1608_v38, %v1818_v28 }
 0x5a4   :  { %v1611_v31 = vmax.f32 %v1603_v52, 1e-20  ;;  %v1820_v41 = vsel %vm877_vm4, %v1609_v40, %v1819_v27 }
 0x5a5   :  { %v1610_v29 = vmax.f32 %v1596_v26, 1e-20 }
 0x5a7   :  { %v1821_v11 = vsel %vm879_vm5, %v1610_v29, %v1820_v41 }
 0x5a8   :  { %v1822_v13 = vsel %vm881_vm6, %v1611_v31, %v1821_v11 }
 0x5a9   :  { %2868 = vmatmul.mubr.msk.f32.vlgmr.msra.gmra.mxu1 %vm511_vm12, %v1822_v13  ;;  %vm3616_vm12 = vmmov %vm3615_vm1 }
 0x5aa   :  { %2876 = vmatpush3.msra.mxu1 %v2095_v37  ;;  %2879 = vmatprep.mubr.msk.f32.mxu1 %vm3128_vm0, %v3127_v0 }
 0x5ab   :  { %2877 = vmatprep.subr.mxu1 %v3127_v0 }
 0x5ac   :  { %2878 = vmatpush3.msra.mxu1 %v2094_v42 }
 0x5ad   :  { %2880 = vmatmul.mubr.msk.f32.vlgmr.msra.gmra.mxu1 %vm3615_vm1, %v2093_v34  ;;  %2889 = vmatprep.subr.mxu1 %v3127_v0 }
 0x5ae   :  { %2893 = vmatprep.mubr.msk.f32.mxu1 %vm3128_vm0, %v3127_v0 }
 0x64c   :  { %v2855_v33 = vpop.f32.mrf.mxu1 }
 0x64d   :  { %v1745_v46 = vmul.f32 %v2855_v33, %v3398_v2 }
 0x64e   :  { %v1705_v43 = vpop.f32.mrf.mxu1 }
 0x64f   :  { %v1744_v56 = vmul.f32 %v1705_v43, %v3398_v2  ;;  %v1759_v45 = vsel %vm285_vm3, %v1745_v46, 0.0 }
 0x650   :  { %v2858_v55 = vpop.f32.mrf.mxu1  ;;  %v1760_v57 = vrot.slane %v1759_v45, 4 }
 0x651   :  { %v1747_v47 = vmul.f32 %v2858_v55, %v3398_v2  ;;  %v1752_v23 = vsel %vm285_vm3, %v1744_v56, 0.0 }
 0x652   :  { %v1715_v48 = vpop.f32.mrf.mxu1  ;;  %v1753_v14 = vrot.slane %v1752_v23, 4  ;;  %v1761_v51 = vadd.f32 %v1760_v57, %v1759_v45 }
 0x653   :  { %v1746_v18 = vmul.f32 %v1715_v48, %v3398_v2  ;;  %v1773_v32 = vsel %vm285_vm3, %v1747_v47, 0.0 }
 0x654   :  { %v1774_v63 = vrot.slane %v1773_v32, 4  ;;  %v1754_v3 = vadd.f32 %v1753_v14, %v1752_v23  ;;  %v1762_v35 = vrot.slane %v1761_v51, 2 }
 0x655   :  { %v2861_v19 = vpop.f32.mrf.mxu1  ;;  %v1766_v44 = vsel %vm285_vm3, %v1746_v18, 0.0 }
 0x656   :  { %v1749_v30 = vmul.f32 %v2861_v19, %v3398_v2  ;;  %v1767_v62 = vrot.slane %v1766_v44, 4  ;;  %v1775_v16 = vadd.f32 %v1774_v63, %v1773_v32  ;;  %v1755_v50 = vrot.slane %v1754_v3, 2 }
 0x657   :  { %v1725_v58 = vpop.f32.mrf.mxu1  ;;  %v1763_v41 = vadd.f32 %v1762_v35, %v1761_v51 }
 0x658   :  { %v1748_v60 = vmul.f32 %v1725_v58, %v3398_v2  ;;  %v1787_v53 = vsel %vm285_vm3, %v1749_v30, 0.0  ;;  %v1768_v7 = vadd.f32 %v1767_v62, %v1766_v44  ;;  %v1776_v26 = vrot.slane %v1775_v16, 2 }
 0x659   :  { %v2864_v21 = vpop.f32.mrf.mxu1  ;;  %v1788_v6 = vrot.slane %v1787_v53, 4  ;;  %v1756_v27 = vadd.f32 %v1755_v50, %v1754_v3  ;;  %v1764_v55 = vrot.slane %v1763_v41, 1 }
 0x65a   :  { %v1751_v49 = vmul.f32 %v2864_v21, %v3398_v2  ;;  %v1780_v8 = vsel %vm285_vm3, %v1748_v60, 0.0  ;;  %v1769_v39 = vrot.slane %v1768_v7, 2  ;;  %v1777_v42 = vadd.f32 %v1776_v26, %v1775_v16  ;;  %v2671_v60 = vld [vmem:[#allocation2 + $0xa0] ss:$0 sm:$0xff] }
 0x65b   :  { %v1735_v59 = vpop.f32.mrf.mxu1  ;;  %v1781_v54 = vrot.slane %v1780_v8, 4  ;;  %v1789_v17 = vadd.f32 %v1788_v6, %v1787_v53  ;;  %v1757_v33 = vrot.slane %v1756_v27, 1 }
 0x65c   :  { %v1750_v61 = vmul.f32 %v1735_v59, %v3398_v2  ;;  %v1801_v4 = vsel %vm285_vm3, %v1751_v49, 0.0  ;;  %v1770_v37 = vadd.f32 %v1769_v39, %v1768_v7  ;;  %v1778_v21 = vrot.slane %v1777_v42, 1 }
 0x65d   :  { %v1802_v2 = vrot.slane %v1801_v4, 4  ;;  %v1782_v12 = vadd.f32 %v1781_v54, %v1780_v8  ;;  %v1790_v11 = vrot.slane %v1789_v17, 2  ;;  %v1758_v46 = vadd.f32 %v1757_v33, %v1756_v27 }
 0x65e   :  { %v1794_v1 = vsel %vm285_vm3, %v1750_v61, 0.0  ;;  %v1771_v19 = vrot.slane %v1770_v37, 1  ;;  %v1765_v59 = vadd.f32 %v1764_v55, %v1763_v41  ;;  %v1779_v14 = vadd.f32 %v1778_v21, %v1777_v42 }
 0x65f   :  { %v1795_v9 = vrot.slane %v1794_v1, 4  ;;  %v1803_v28 = vadd.f32 %v1802_v2, %v1801_v4  ;;  %v1783_v29 = vrot.slane %v1782_v12, 2  ;;  %v1791_v48 = vadd.f32 %v1790_v11, %v1789_v17 }
 0x660   :  { %v1772_v30 = vadd.f32 %v1771_v19, %v1770_v37 }
 0x661   :  { %v1796_v22 = vadd.f32 %v1795_v9, %v1794_v1  ;;  %v1804_v34 = vrot.slane %v1803_v28, 2  ;;  %v1784_v43 = vadd.f32 %v1783_v29, %v1782_v12  ;;  %v1792_v23 = vrot.slane %v1791_v48, 1 }
 0x663   :  { %v1797_v13 = vrot.slane %v1796_v22, 2  ;;  %v1805_v56 = vadd.f32 %v1804_v34, %v1803_v28  ;;  %v1785_v47 = vrot.slane %v1784_v43, 1  ;;  %v1793_v3 = vadd.f32 %v1792_v23, %v1791_v48 }
 0x665   :  { %v1798_v58 = vadd.f32 %v1797_v13, %v1796_v22  ;;  %v1806_v49 = vrot.slane %v1805_v56, 1  ;;  %v1786_v63 = vadd.f32 %v1785_v47, %v1784_v43 }
 0x667   :  { %v1799_v32 = vrot.slane %v1798_v58, 1  ;;  %v1807_v2 = vadd.f32 %v1806_v49, %v1805_v56 }
 0x669   :  { %v1891_v24 = vpop.f32.mrf.mxu1  ;;  %v1800_v6 = vadd.f32 %v1799_v32, %v1798_v58 }
 0x66a   :  { %v1896_v25 = vrot.slane %v1891_v24, 1  ;;  %v1897_v10 = vrot.slane %v1891_v24, 2  ;;  %v1898_v36 = vrot.slane %v1891_v24, 3  ;;  %v1899_v15 = vrot.slane %v1891_v24, 4 }
 0x66b   :  { %3016 = vrcp.f32 %v1891_v24  ;;  %v2869_v5 = vpop.f32.mrf.mxu1  ;;  %v1900_v20 = vrot.slane %v1891_v24, 5  ;;  %v1901_v38 = vrot.slane %v1891_v24, 6  ;;  %v1902_v40 = vrot.slane %v1891_v24, 7 }
 0x66c   :  { %3018 = vrcp.f32 %v1896_v25  ;;  %v2681_v25 = vld [vmem:[#allocation2 + $0xb8] ss:$0 sm:$0xff] }
 0x66d   :  { %3020 = vrcp.f32 %v1897_v10  ;;  %v3550_v52 = vpop.f32.mrf.mxu1 }
 0x66e   :  { %3022 = vrcp.f32 %v1898_v36  ;;  %v3562_v22 = vadd.f32 %v2681_v25, %v3550_v52 }
 0x66f   :  { %3024 = vrcp.f32 %v1899_v15  ;;  %v2881_v31 = vpop.f32.mrf.mxu1 }
 0x670   :  { %3026 = vrcp.f32 %v1900_v20  ;;  %v2683_v31 = vmul.f32 -1.442695, %v3562_v22 }
 0x671   :  { %3028 = vrcp.f32 %v1901_v38 }
 0x672   :  { %3030 = vrcp.f32 %v1902_v40 }
 0x678   :  { %v3017_v18 = vpop.eup %3016 }
 0x679   :  { %v3019_v45 = vpop.eup %3018  ;;  %v1912_v44 = vmul.f32 %v3017_v18, %v1758_v46 }
 0x67a   :  { %v3021_v61 = vpop.eup %3020  ;;  %v1914_v57 = vmul.f32 %v3019_v45, %v1765_v59 }
 0x67b   :  { %v3023_v8 = vpop.eup %3022  ;;  %v1916_v62 = vmul.f32 %v3021_v61, %v1772_v30  ;;  %v3552_v53 = vadd.f32 %v2671_v60, %v1912_v44 }
 0x67c   :  { %v3025_v1 = vpop.eup %3024  ;;  %v1918_v54 = vmul.f32 %v3023_v8, %v1779_v14  ;;  %v3554_v4 = vadd.f32 %v2671_v60, %v1914_v57 }
 0x67d   :  { %v3027_v51 = vpop.eup %3026  ;;  %v1920_v16 = vmul.f32 %v3025_v1, %v1786_v63  ;;  %v3556_v7 = vadd.f32 %v2671_v60, %v1916_v62  ;;  %v2672_v9 = vmul.f32 -1.442695, %v3552_v53 }
 0x67e   :  { %v3029_v24 = vpop.eup %3028  ;;  %v1922_v10 = vmul.f32 %v3027_v51, %v1793_v3  ;;  %v1934_v36 = vadd.f32 %v2671_v60, %v1918_v54  ;;  %v2673_v50 = vmul.f32 -1.442695, %v3554_v4 }
 0x67f   :  { %v3031_v12 = vpop.eup %3030  ;;  %v1924_v15 = vmul.f32 %v3029_v24, %v1800_v6  ;;  %v1935_v5 = vadd.f32 %v2671_v60, %v1920_v16  ;;  %3032 = vpow2.f32 %v2672_v9  ;;  %v2674_v35 = vmul.f32 -1.442695, %v3556_v7 }
 0x680   :  { %v1926_v17 = vmul.f32 %v3031_v12, %v1807_v2  ;;  %v1936_v20 = vadd.f32 %v2671_v60, %v1922_v10  ;;  %3034 = vpow2.f32 %v2673_v50  ;;  %v2675_v39 = vmul.f32 -1.442695, %v1934_v36  ;;  %v1995_v50 = vld [vmem:[%s3610_s2] sm:$0x3]  ;;  %s3132_s2 = smov [#allocation5]  }
 0x681   :  { %v1937_v38 = vadd.f32 %v2671_v60, %v1924_v15  ;;  %3036 = vpow2.f32 %v2674_v35  ;;  %v2676_v26 = vmul.f32 -1.442695, %v1935_v5  ;;  %v2182_v15 = vld [vmem:[#allocation2 + $0xc8] sm:$0xff]  ;;  %v2181_v35 = vld [vmem:[#allocation2 + $0xc0] sm:$0xff]  ;;  %s2610_s19 = sshll.u32 %s3132_s2, 4  ;;  %s2611_s19 = int_to_ptr.vmem [resolvable:$true] %s2610_s19 }
 0x682   :  { %v1938_v28 = vadd.f32 %v2671_v60, %v1926_v17  ;;  %3038 = vpow2.f32 %v2675_v39  ;;  %v2677_v40 = vmul.f32 -1.442695, %v1936_v20  ;;  %v2270_v39 = vld [vmem:[#allocation2 + $0xe8] sm:$0xff]  ;;  %s3100_s20 = scalar_lea.vmem %s2611_s19, 32  ;;  %p3105_p6 = scmp.lt.s32.totalorder %s2611_s19, %s2611_s19 }
 0x683   :  { %v2678_v27 = vmul.f32 -1.442695, %v1937_v38  ;;  %3040 = vpow2.f32 %v2676_v26  ;;  %v2273_v26 = vld [vmem:[#allocation2 + $0x100] sm:$0xff]  ;;  %p3101_p5 = scmp.ne.s32.totalorder %s2611_s19, %s3100_s20  ;;  %p3106_p7 = scmp.lt.s32.totalorder %s3100_s20, %s3100_s20 }
 0x684   :  { %v2679_v29 = vmul.f32 -1.442695, %v1938_v28  ;;  %3042 = vpow2.f32 %v2677_v40  ;;  %2890 = vmatpush3.msra.mxu1 %v2273_v26 }
 0x685   :  { %3044 = vpow2.f32 %v2678_v27  ;;  %2891 = vmatprep.subr.mxu1 %v3127_v0  ;;  %p3107_p8 = por %p3106_p7, %p3105_p6 }
 0x686   :  { %3046 = vpow2.f32 %v2679_v29  ;;  %v2684_v29 = vld [vmem:[#allocation2 + $0xd0] ss:$0 sm:$0xff] }
 0x687   :  { %3048 = vpow2.f32 %v2683_v31  ;;  %p3108_p9 = pnand %p3107_p8, %p3101_p5 }
 0x68c   :  { %v3033_v41 = vpop.eup %3032 }
 0x68d   :  { %v3035_v11 = vpop.eup %3034  ;;  %v1963_v37 = vadd.f32 1.0, %v3033_v41 }
 0x68e   :  { %v3037_v52 = vpop.eup %3036  ;;  %v1964_v13 = vadd.f32 1.0, %v3035_v11 }
 0x68f   :  { %v3039_v42 = vpop.eup %3038  ;;  %v1965_v34 = vadd.f32 1.0, %v3037_v52  ;;  %3050 = vrcp.f32 %v1963_v37 }
 0x690   :  { %v1966_v33 = vadd.f32 1.0, %v3039_v42  ;;  %3052 = vrcp.f32 %v1964_v13  ;;  %v3041_v43 = vpop.eup %3040 }
 0x691   :  { %3054 = vrcp.f32 %v1965_v34  ;;  %v3043_v55 = vpop.eup %3042  ;;  %v1967_v48 = vadd.f32 1.0, %v3041_v43  ;;  %v2435_v43 = vld [vmem:[#allocation2 + $0x120] sm:$0xff] }
 0x692   :  { %3056 = vrcp.f32 %v1966_v33  ;;  %v3045_v19 = vpop.eup %3044  ;;  %v1968_v58 = vadd.f32 1.0, %v3043_v55  ;;  %v2436_v33 = vld [vmem:[#allocation2 + $0x128] sm:$0xff]  ;;  %v2434_v55 = vld [vmem:[#allocation2 + $0x118] sm:$0xff] }
 0x693   :  { %v3047_v21 = vpop.eup %3046  ;;  %v1969_v56 = vadd.f32 1.0, %v3045_v19  ;;  %3058 = vrcp.f32 %v1967_v48  ;;  %v2433_v48 = vld [vmem:[#allocation2 + $0x110] sm:$0xff] }
 0x694   :  { %v1970_v46 = vadd.f32 1.0, %v3047_v21  ;;  %3060 = vrcp.f32 %v1968_v58  ;;  %v3049_v47 = vpop.eup %3048 }
 0x695   :  { %3062 = vrcp.f32 %v1969_v56  ;;  %v2177_v18 = vadd.f32 1.0, %v3049_v47  ;;  %v2689_v56 = vld [vmem:[#allocation2 + $0x108] ss:$0 sm:$0xff] }
 0x696   :  { %3064 = vrcp.f32 %v1970_v46 }
 0x697   :  { %3066 = vrcp.f32 %v2177_v18 }
 0x69c   :  { %v3051_v59 = vpop.eup %3050 }
 0x69d   :  { %v3053_v23 = vpop.eup %3052  ;;  %v1987_v44 = vmul.f32 %v3051_v59, %v3552_v53 }
 0x69e   :  { %v3055_v60 = vpop.eup %3054  ;;  %v1988_v45 = vmul.f32 %v3053_v23, %v3554_v4 }
 0x69f   :  { %v3057_v30 = vpop.eup %3056  ;;  %v1989_v32 = vmul.f32 %v3055_v60, %v3556_v7 }
 0x6a0   :  { %v1990_v61 = vmul.f32 %v3057_v30, %v1934_v36  ;;  %v2004_v14 = vrot.slane %v1988_v45, 7  ;;  %v3059_v49 = vpop.eup %3058 }
 0x6a1   :  { %v2006_v57 = vrot.slane %v1989_v32, 6  ;;  %v3061_v8 = vpop.eup %3060  ;;  %v1991_v63 = vmul.f32 %v3059_v49, %v1935_v5  ;;  %v2523_v32 = vld [vmem:[#allocation2 + $0x140] sm:$0xff] }
 0x6a2   :  { %v2005_v62 = vsel %vm869_vm13, %v2004_v14, %v1987_v44  ;;  %v2008_v1 = vrot.slane %v1990_v61, 5  ;;  %v3063_v3 = vpop.eup %3062  ;;  %v1992_v54 = vmul.f32 %v3061_v8, %v1936_v20  ;;  %v2271_v20 = vld [vmem:[#allocation2 + $0xf0] sm:$0xff]  ;;  %vm3617_vm13 = vmmov %vm3615_vm1  ;;  %v2522_v44 = vld [vmem:[#allocation2 + $0x138] sm:$0xff] }
 0x6a3   :  { %v2007_v51 = vsel %vm871_vm14, %v2006_v57, %v2005_v62  ;;  %v3065_v6 = vpop.eup %3064  ;;  %v1993_v4 = vmul.f32 %v3063_v3, %v1937_v38  ;;  %v2010_v7 = vrot.slane %v1991_v63, 4  ;;  %v2269_v38 = vld [vmem:[#allocation2 + $0xe0] sm:$0xff]  ;;  %v2691_v61 = vld [vmem:[#allocation2 + $0x130] ss:$0 sm:$0xff] }
 0x6a4   :  { %v2009_v16 = vsel %vm873_vm15, %v2008_v1, %v2007_v51  ;;  %v1994_v9 = vmul.f32 %v3065_v6, %v1938_v28  ;;  %v2012_v53 = vrot.slane %v1992_v54, 3  ;;  %v3067_v5 = vpop.eup %3066  ;;  %v2272_v28 = vld [vmem:[#allocation2 + $0xf8] sm:$0xff]  ;;  %v2694_v54 = vld [vmem:[#allocation2 + $0x148] ss:$0 sm:$0xff] }
 0x6a5   :  { %v2011_v24 = vsel %vm875_vm2, %v2010_v7, %v2009_v16  ;;  %v2014_v2 = vrot.slane %v1993_v4, 2  ;;  %v2180_v17 = vmul.f32 %v3067_v5, %v3562_v22  ;;  %v2268_v22 = vld [vmem:[#allocation2 + $0xd8] sm:$0xff]  ;;  %2892 = vmatpush3.msra.mxu1 %v2272_v28 }
 0x6a6   :  { %v2013_v25 = vsel %vm877_vm4, %v2012_v53, %v2011_v24  ;;  %v2016_v10 = vrot.slane %v1994_v9, 1  ;;  %2907 = vmatprep.subr.mxu1 %v3127_v0 }
 0x6a7   :  { %v2015_v36 = vsel %vm879_vm5, %v2014_v2, %v2013_v25 }
 0x6a8   :  { %v2017_v12 = vsel %vm881_vm6, %v2016_v10, %v2015_v36 }
 0x6a9   :  { %2871 = vmatpush3.msra.mxu0 %v2017_v12 }
 0x6aa   :  { %2873 = vmatmul.mubr.msk.f32.vlgmr.msra.gmra.mxu0 %vm2019_vm11, %v1995_v50  ;;  %2882 = vmatprep.subr.mxu0 %v3127_v0 }
 0x6ab   :  { %2883 = vmatpush3.msra.mxu0 %v2182_v15  ;;  %2886 = vmatprep.mubr.msk.f32.mxu0 %vm3128_vm0, %v3127_v0 }
 0x6ac   :  { %2884 = vmatprep.subr.mxu0 %v3127_v0 }
 0x6ad   :  { %2885 = vmatpush3.msra.mxu0 %v2181_v35 }
 0x6ae   :  { %2887 = vmatmul.mubr.msk.f32.vlgmr.msra.gmra.mxu0 %vm3616_vm12, %v2180_v17  ;;  %2896 = vmatprep.subr.mxu0 %v3127_v0 }
 0x6af   :  { %2904 = vmatprep.mubr.msk.f32.mxu0 %vm3128_vm0, %v3127_v0  ;;  %2897 = vmatpush3.msra.mxu0 %v2271_v20 }
 0x6b0   :  { %2898 = vmatprep.subr.mxu0 %v3127_v0 }
 0x6b1   :  { %2899 = vmatpush3.msra.mxu0 %v2270_v39 }
 0x6b2   :  { %2900 = vmatprep.subr.mxu0 %v3127_v0 }
 0x6b3   :  { %2901 = vmatpush3.msra.mxu0 %v2269_v38 }
 0x6b4   :  { %2902 = vmatprep.subr.mxu0 %v3127_v0 }
 0x6b5   :  { %2903 = vmatpush3.msra.mxu0 %v2268_v22 }
 0x6b6   :  { %2918 = vmatprep.subr.mxu0 %v3127_v0 }
 0x76a   :  { %v2089_v40 = vpop.f32.mrf.mxu0 }
 0x76b   :  { %2905 = vmatmul.mubr.msk.f32.vlgmr.msra.gmra.mxu0 %vm285_vm3, %v2089_v40 }
 0x76c   :  { %v2874_v27 = vpop.f32.mrf.mxu0  ;;  %2922 = vmatprep.mubr.msk.f32.mxu0 %vm3128_vm0, %v3127_v0  ;;  %2919 = vmatpush3.msra.mxu0 %v2523_v32 }
 0x76d   :  { %2920 = vmatprep.subr.mxu0 %v3127_v0 }
 0x76e   :  { %v2257_v31 = vpop.f32.mrf.mxu0  ;;  %2921 = vmatpush3.msra.mxu0 %v2522_v44 }
 0x76f   :  { %v2258_v41 = vadd.f32 %v2684_v29, %v2257_v31 }
 0x770   :  { %v2888_v11 = vpop.f32.mrf.mxu0 }
 0x771   :  { %v2686_v37 = vmul.f32 -1.442695, %v2258_v41 }
 0x773   :  { %3068 = vpow2.f32 %v2686_v37 }
 0x780   :  { %v3069_v52 = vpop.eup %3068 }
 0x781   :  { %v2264_v13 = vadd.f32 1.0, %v3069_v52 }
 0x783   :  { %3070 = vrcp.f32 %v2264_v13 }
 0x790   :  { %v3071_v42 = vpop.eup %3070 }
 0x791   :  { %v2267_v34 = vmul.f32 %v3071_v42, %v2258_v41 }
 0x793   :  { %2894 = vmatmul.mubr.msk.f32.vlgmr.msra.gmra.mxu1 %vm3617_vm13, %v2267_v34 }
 0x794   :  { %2915 = vmatprep.mubr.msk.f32.mxu1 %vm3128_vm0, %v3127_v0  ;;  %2908 = vmatpush3.msra.mxu1 %v2436_v33  ;;  %vm3618_vm0 = vmmov %vm3615_vm1 }
 0x795   :  { %2909 = vmatprep.subr.mxu1 %v3127_v0 }
 0x796   :  { %2910 = vmatpush3.msra.mxu1 %v2435_v43 }
 0x797   :  { %2911 = vmatprep.subr.mxu1 %v3127_v0 }
 0x798   :  { %2912 = vmatpush3.msra.mxu1 %v2434_v55 }
 0x799   :  { %2913 = vmatprep.subr.mxu1 %v3127_v0 }
 0x79a   :  { %2914 = vmatpush3.msra.mxu1 %v2433_v48 }
 0x82b   :  { %v2416_v19 = vpop.f32.mrf.mxu0 }
 0x82d   :  { %v2906_v58 = vpop.f32.mrf.mxu0 }
 0x853   :  { %v2343_v21 = vpop.f32.mrf.mxu1 }
 0x854   :  { %v2417_v46 = vadd.f32 %v2416_v19, %v2343_v21 }
 0x855   :  { %v2895_v47 = vpop.f32.mrf.mxu1 }
 0x856   :  { %v2425_v18 = vadd.f32 %v2689_v56, %v2417_v46 }
 0x858   :  { %v2690_v59 = vmul.f32 -1.442695, %v2425_v18 }
 0x85a   :  { %3072 = vpow2.f32 %v2690_v59 }
 0x867   :  { %v3073_v23 = vpop.eup %3072 }
 0x868   :  { %v2429_v60 = vadd.f32 1.0, %v3073_v23 }
 0x86a   :  { %3074 = vrcp.f32 %v2429_v60 }
 0x877   :  { %v3075_v45 = vpop.eup %3074 }
 0x878   :  { %v2432_v30 = vmul.f32 %v3075_v45, %v2425_v18 }
 0x87a   :  { %2916 = vmatmul.mubr.msk.f32.vlgmr.msra.gmra.mxu1 %vm285_vm3, %v2432_v30  ;;  %vm2602_vm3 = vcmask 9216  }
 0x93a   :  { %v2511_v14 = vpop.f32.mrf.mxu1 }
 0x93b   :  { %v2512_v49 = vadd.f32 %v2691_v61, %v2511_v14 }
 0x93c   :  { %v2917_v57 = vpop.f32.mrf.mxu1 }
 0x93d   :  { %v2693_v8 = vmul.f32 -1.442695, %v2512_v49 }
 0x93f   :  { %3076 = vpow2.f32 %v2693_v8 }
 0x94c   :  { %v3077_v63 = vpop.eup %3076 }
 0x94d   :  { %v2518_v62 = vadd.f32 1.0, %v3077_v63 }
 0x94f   :  { %3078 = vrcp.f32 %v2518_v62 }
 0x95c   :  { %v3079_v1 = vpop.eup %3078 }
 0x95d   :  { %v2521_v3 = vmul.f32 %v3079_v1, %v2512_v49 }
 0x95f   :  { %2923 = vmatmul.mubr.msk.f32.vlgmr.msra.gmra.mxu0 %vm3618_vm0, %v2521_v3 }
 0xa1f   :  { %v2598_v51 = vpop.f32.mrf.mxu0 }
 0xa20   :  { %v2599_v0 = vadd.f32 %v2694_v54, %v2598_v51 }
 0xa21   :  { %v2924_v6 = vpop.f32.mrf.mxu0 }
 0xa22   :  { %2603 = vst.msk [vmem:[#allocation5] sm:$0x3] %vm2602_vm3, %v2599_v0 }
 0xa23   :  { %3111 = shalt.err (!%p3108_p9)
}
 0xa24   :  { %2613 = dma.vmem_to_hbm [thread:$0]  %s2611_s19, 32, %s3613_s5, [#allocation4]  }
 0xa25   :  { %3122 = dma.done.wait [#allocation4], 32  }
 0xa26   :  { %3123 = vsyncadd [#allocation4], 4294967264 }
 0xa27   :  { %2617 = vsyncpa [#allocation3], 1 }
 0xa28   :  { %2618 = vsyncpa [#allocation4], 1 }

</bundles_post_ra>
